<compile_context>
chip_gen: v7x
topology: tpu7x:2x2x1
jax: 0.10.0
libtpu: 0.0.40
codegen_flags: <defaults>
</compile_context>

<pallas_src>
import jax
import jax.numpy as jnp
import numpy as np
from jax.experimental import pallas as pl
from jax.experimental.pallas import tpu as pltpu


def _cheb_conv_kernel(x_ref, sa_ref, cheb_ref, theta_ref, o_ref, a_ref):
    """One batch-block of the ChebConvWithSAt forward.

    x_ref:     (TB, T, Np, F)  input signal (single copy), vertex-major / feature-minor
    sa_ref:    (TB, Np, Np)    spatial attention, pre-transposed: sa[b, i, j] = SAt[b, j, i]
    cheb_ref:  (K, Np, Np)     Chebyshev polynomials, pre-transposed: cheb[k, i, j] = T_k[j, i]
    theta_ref: (K, F, O)       filter weights
    o_ref:     (TB, T, Np, O)  output block (ReLU applied)
    a_ref:     (TB, K*Np, Np)  VMEM scratch: K-folded attention-weighted operator
    """
    TB, T, Np, F = x_ref.shape
    K = cheb_ref.shape[0]
    O = theta_ref.shape[2]

    # ---- K-folded graph operator, built once per batch block (VPU) ----------
    # a[b, k*Np + i, j] = T_k[j, i] * SAt[b, j, i]
    sa = sa_ref[...]                                        # (TB, Np, Np)
    for k in range(K):                                      # K small & static
        a_ref[:, k * Np:(k + 1) * Np, :] = cheb_ref[k] * sa
    a_all = a_ref[...]                                      # (TB, K*Np, Np)

    # ---- per timestep: one big graph matmul + K small feature matmuls -------
    for t in range(T):                                      # static unroll; bounds live ranges
        x_t = x_ref[:, t]                                   # (TB, Np, F)
        # rhs[b, k*Np+i, f] = sum_j a[b, k*Np+i, j] * x[b, j, f]   (MXU, batched)
        rhs_all = jnp.einsum('bpj,bjf->bpf', a_all, x_t,
                             preferred_element_type=jnp.float32)      # (TB, K*Np, F)
        acc = jnp.zeros((TB, Np, O), jnp.float32)
        for k in range(K):
            rhs_k = rhs_all[:, k * Np:(k + 1) * Np, :]      # static sublane slice
            # acc[b, i, o] += sum_f rhs_k[b, i, f] * Theta[k, f, o]  (MXU)
            acc = acc + jnp.einsum('bif,fo->bio', rhs_k, theta_ref[k],
                                   preferred_element_type=jnp.float32)
        o_ref[:, t] = jnp.maximum(acc, 0.0).astype(o_ref.dtype)        # ReLU


def _padded_elems(shape):
    """Element count after (8, 128) tiling of the last two dims."""
    s = list(shape)
    if len(s) >= 2:
        s[-2] = -(-s[-2] // 8) * 8
        s[-1] = -(-s[-1] // 128) * 128
    elif len(s) == 1:
        s[-1] = -(-s[-1] // 128) * 128
    return int(np.prod(s)) if s else 1


def _vmem_capacity_bytes():
    """Physical VMEM of this TPU generation (fallback: 64 MiB, v7x per-core)."""
    try:
        cap = int(pltpu.get_tpu_info().vmem_capacity_bytes)
        if cap > 0:
            return cap
    except Exception:
        pass
    return 64 * 1024 * 1024


def _vmem_bytes_estimate(tb, n, t, f, o, k):
    """Rough VMEM footprint (bytes) of one grid step for batch-block size tb."""
    dbl = (_padded_elems((tb, t, n, f)) +        # x block
           _padded_elems((tb, n, n)) +           # spatial-attention block
           _padded_elems((tb, t, n, o)))         # output block
    # Grid-invariant inputs (constant index_map); conservatively 2x-counted.
    dbl += _padded_elems((k, n, n)) + _padded_elems((k, f, o))
    single = (2 * _padded_elems((tb, k * n, n)) +   # A_all scratch + value
              _padded_elems((tb, k * n, f)) +       # rhs_all live value
              _padded_elems((tb, n, o)))            # per-t accumulator
    return 4 * (2 * dbl + single)


def _choose_tb(b, n, t, f, o, k, budget_bytes):
    """Largest batch-block (divisor of B) fitting the VMEM budget, preferring an
    even number of grid steps >= 2 so v7x's two TensorCores stay balanced."""
    divisors = [d for d in range(1, b + 1) if b % d == 0]
    fits = [d for d in divisors
            if _vmem_bytes_estimate(d, n, t, f, o, k) <= budget_bytes]
    if not fits:
        return 1
    even_steps = [d for d in fits if (b // d) >= 2 and (b // d) % 2 == 0]
    if even_steps:
        return max(even_steps)
    multi_steps = [d for d in fits if (b // d) >= 2]
    if multi_steps:
        return max(multi_steps)
    return max(fits)


def cheb_conv_with_sat(x, spatial_attention, cheb_polynomials, theta):
    """
    x:                 (B, N, F, T)   batch, vertices, features, timesteps
    spatial_attention: (B, N, N)
    cheb_polynomials:  (K, N, N)      stacked T_0 .. T_{K-1}
    theta:             (K, F, num_filters)
    returns:           (B, N, num_filters, T), float32
    """
    B, N, F, T = x.shape
    K, _, O = theta.shape
    f32 = jnp.float32

    # ---- plain-JAX glue: layout only, no math ----
    Np = -(-N // 8) * 8                    # vertex dim padded to sublane multiple
    pad_n = Np - N

    x_t = jnp.transpose(x, (0, 3, 1, 2)).astype(f32)                   # (B, T, N, F)
    sa_t = jnp.transpose(spatial_attention, (0, 2, 1)).astype(f32)     # [b,i,j]=SA[b,j,i]
    cheb_t = jnp.transpose(cheb_polynomials, (0, 2, 1)).astype(f32)    # [k,i,j]=T_k[j,i]
    if pad_n:
        x_t = jnp.pad(x_t, ((0, 0), (0, 0), (0, pad_n), (0, 0)))
        sa_t = jnp.pad(sa_t, ((0, 0), (0, pad_n), (0, pad_n)))
        cheb_t = jnp.pad(cheb_t, ((0, 0), (0, pad_n), (0, pad_n)))
    theta_f = theta.astype(f32)

    # ---- generation-aware VMEM budget & batch blocking ----
    cap = _vmem_capacity_bytes()
    budget = int(0.55 * cap)
    TB = _choose_tb(B, Np, T, F, O, K, budget)
    est = _vmem_bytes_estimate(TB, Np, T, F, O, K)
    vmem_limit = int(min(0.9 * cap, max(est + (8 << 20), 0.8 * cap)))

    grid = (B // TB,)

    out = pl.pallas_call(
        _cheb_conv_kernel,
        out_shape=jax.ShapeDtypeStruct((B, T, Np, O), f32),
        grid_spec=pltpu.PrefetchScalarGridSpec(
            num_scalar_prefetch=0,
            grid=grid,
            in_specs=[
                pl.BlockSpec((TB, T, Np, F), lambda b: (b, 0, 0, 0)),   # x (one copy)
                pl.BlockSpec((TB, Np, Np), lambda b: (b, 0, 0)),        # SAt^T
                pl.BlockSpec((K, Np, Np), lambda b: (0, 0, 0)),         # cheb^T (invariant)
                pl.BlockSpec((K, F, O), lambda b: (0, 0, 0)),           # Theta (invariant)
            ],
            out_specs=pl.BlockSpec((TB, T, Np, O), lambda b: (b, 0, 0, 0)),
            scratch_shapes=[pltpu.VMEM((TB, K * Np, Np), f32)],         # A_all
        ),
        compiler_params=pltpu.CompilerParams(
            dimension_semantics=("parallel",),
            vmem_limit_bytes=vmem_limit),
    )(x_t, sa_t, cheb_t, theta_f)

    out = out[:, :, :N, :]                            # drop vertex padding
    return jnp.transpose(out, (0, 2, 3, 1))           # (B, T, N, O) -> (B, N, O, T)


def cheb_conv_reference(x, spatial_attention, cheb_polynomials, theta):
    """Pure-JAX transcription of the PyTorch forward (float32)."""
    x = x.astype(jnp.float32)
    sa = spatial_attention.astype(jnp.float32)
    cheb = cheb_polynomials.astype(jnp.float32)
    th = theta.astype(jnp.float32)
    B, N, F, T = x.shape
    K, _, O = th.shape
    outs = []
    for t in range(T):
        graph_signal = x[:, :, :, t]                                   # (B, N, F)
        out = jnp.zeros((B, N, O), jnp.float32)
        for k in range(K):
            t_k_with_at = cheb[k] * sa                                 # (B, N, N)
            rhs = jnp.matmul(jnp.transpose(t_k_with_at, (0, 2, 1)),
                             graph_signal)                             # (B, N, F)
            out = out + jnp.matmul(rhs, th[k])                         # (B, N, O)
        outs.append(out[..., None])
    return jax.nn.relu(jnp.concatenate(outs, axis=-1))                 # (B, N, O, T)


if __name__ == "__main__":
    B, N, F, T = 2, 16, 4, 8          # batch, vertices, features, timesteps
    K, num_filters = 3, 32
    init_scale = 0.1

    key = jax.random.PRNGKey(0)
    kx, ks, kc, kt = jax.random.split(key, 4)
    x = jax.random.normal(kx, (B, N, F, T), dtype=jnp.float32)
    spatial_attention = jax.nn.softmax(
        jax.random.normal(ks, (B, N, N), dtype=jnp.float32), axis=1)
    cheb_polynomials = jax.random.normal(kc, (K, N, N), dtype=jnp.float32)
    theta = init_scale * jax.random.normal(
        kt, (K, F, num_filters), dtype=jnp.float32)

    out = jax.block_until_ready(
        cheb_conv_with_sat(x, spatial_attention, cheb_polynomials, theta))
    ref = jax.block_until_ready(
        cheb_conv_reference(x, spatial_attention, cheb_polynomials, theta))

    np.testing.assert_allclose(np.asarray(out), np.asarray(ref),
                               rtol=1e-4, atol=1e-4)
    print("KERNEL_OK")
</pallas_src>

<mosaic_0001>
module attributes {stable_mosaic.version = 11 : i64} {
  func.func @_cheb_conv_kernel(%arg0: i32, %arg1: memref<1x8x16x4xf32, #tpu.memory_space<vmem>>, %arg2: memref<1x16x16xf32, #tpu.memory_space<vmem>>, %arg3: memref<3x16x16xf32, #tpu.memory_space<vmem>>, %arg4: memref<3x4x32xf32, #tpu.memory_space<vmem>>, %arg5: memref<1x8x16x32xf32, #tpu.memory_space<vmem>>, %arg6: memref<1x48x16xf32, #tpu.memory_space<vmem>>) attributes {dimension_semantics = [#tpu.dimension_semantics<parallel>], iteration_bounds = array<i64: 2>, scalar_prefetch = 0 : i64, scratch_operands = 1 : i64, tpu.core_type = #tpu.core_type<tc>, window_params = [{transform_indices = @transform_0, window_bounds = array<i64: 1, 8, 16, 4>}, {transform_indices = @transform_1, window_bounds = array<i64: 1, 16, 16>}, {pipeline_mode = #tpu.pipeline_mode<synchronous>, transform_indices = @transform_2, window_bounds = array<i64: 3, 16, 16>}, {pipeline_mode = #tpu.pipeline_mode<synchronous>, transform_indices = @transform_3, window_bounds = array<i64: 3, 4, 32>}, {transform_indices = @transform_4, window_bounds = array<i64: 1, 8, 16, 32>}]} {
    %c0 = arith.constant 0 : index
    %c0_0 = arith.constant 0 : index
    %c0_1 = arith.constant 0 : index
    %0 = vector.load %arg2[%c0, %c0_0, %c0_1] : memref<1x16x16xf32, #tpu.memory_space<vmem>>, vector<1x16x16xf32>
    %c0_2 = arith.constant 0 : index
    %c0_3 = arith.constant 0 : index
    %c0_4 = arith.constant 0 : index
    %1 = vector.load %arg3[%c0_2, %c0_3, %c0_4] : memref<3x16x16xf32, #tpu.memory_space<vmem>>, vector<1x16x16xf32>
    %2 = vector.shape_cast %1 : vector<1x16x16xf32> to vector<16x16xf32>
    %3 = vector.shape_cast %2 : vector<16x16xf32> to vector<1x16x16xf32>
    %4 = arith.mulf %3, %0 : vector<1x16x16xf32>
    %c0_5 = arith.constant 0 : index
    %c0_6 = arith.constant 0 : index
    %c0_7 = arith.constant 0 : index
    %5 = vector.load %arg6[%c0_5, %c0_6, %c0_7] : memref<1x48x16xf32, #tpu.memory_space<vmem>>, vector<1x16x16xf32>
    tpu.vector_store %arg6[%c0_5, %c0_6, %c0_7], %4 {strides = array<i32>} : memref<1x48x16xf32, #tpu.memory_space<vmem>>, vector<1x16x16xf32>,
    %c1 = arith.constant 1 : index
    %c0_8 = arith.constant 0 : index
    %c0_9 = arith.constant 0 : index
    %6 = vector.load %arg3[%c1, %c0_8, %c0_9] : memref<3x16x16xf32, #tpu.memory_space<vmem>>, vector<1x16x16xf32>
    %7 = vector.shape_cast %6 : vector<1x16x16xf32> to vector<16x16xf32>
    %8 = vector.shape_cast %7 : vector<16x16xf32> to vector<1x16x16xf32>
    %9 = arith.mulf %8, %0 : vector<1x16x16xf32>
    %c0_10 = arith.constant 0 : index
    %c16 = arith.constant 16 : index
    %c0_11 = arith.constant 0 : index
    %10 = vector.load %arg6[%c0_10, %c16, %c0_11] : memref<1x48x16xf32, #tpu.memory_space<vmem>>, vector<1x16x16xf32>
    tpu.vector_store %arg6[%c0_10, %c16, %c0_11], %9 {strides = array<i32>} : memref<1x48x16xf32, #tpu.memory_space<vmem>>, vector<1x16x16xf32>,
    %c2 = arith.constant 2 : index
    %c0_12 = arith.constant 0 : index
    %c0_13 = arith.constant 0 : index
    %11 = vector.load %arg3[%c2, %c0_12, %c0_13] : memref<3x16x16xf32, #tpu.memory_space<vmem>>, vector<1x16x16xf32>
    %12 = vector.shape_cast %11 : vector<1x16x16xf32> to vector<16x16xf32>
    %13 = vector.shape_cast %12 : vector<16x16xf32> to vector<1x16x16xf32>
    %14 = arith.mulf %13, %0 : vector<1x16x16xf32>
    %c0_14 = arith.constant 0 : index
    %c32 = arith.constant 32 : index
    %c0_15 = arith.constant 0 : index
    %15 = vector.load %arg6[%c0_14, %c32, %c0_15] : memref<1x48x16xf32, #tpu.memory_space<vmem>>, vector<1x16x16xf32>
    tpu.vector_store %arg6[%c0_14, %c32, %c0_15], %14 {strides = array<i32>} : memref<1x48x16xf32, #tpu.memory_space<vmem>>, vector<1x16x16xf32>,
    %c0_16 = arith.constant 0 : index
    %c0_17 = arith.constant 0 : index
    %c0_18 = arith.constant 0 : index
    %16 = vector.load %arg6[%c0_16, %c0_17, %c0_18] : memref<1x48x16xf32, #tpu.memory_space<vmem>>, vector<1x48x16xf32>
    %c0_19 = arith.constant 0 : index
    %c0_20 = arith.constant 0 : index
    %c0_21 = arith.constant 0 : index
    %c0_22 = arith.constant 0 : index
    %17 = vector.load %arg1[%c0_19, %c0_20, %c0_21, %c0_22] : memref<1x8x16x4xf32, #tpu.memory_space<vmem>>, vector<1x1x16x4xf32>
    %18 = vector.shape_cast %17 : vector<1x1x16x4xf32> to vector<1x16x4xf32>
    "tpu.trace_start"() <{level = 10 : i32, message = "bpj,bjf->bpf"}> : () -> ()
    %cst = arith.constant dense<0.000000e+00> : vector<1x48x4xf32>
    %19 = tpu.matmul %16, %18, %cst {dimension_numbers = #tpu.dot_dimension_numbers<[2], [1], [1], [2], [0, 0, 0, 1, 1, 2], [0], [0]>} : vector<1x48x16xf32>, vector<1x16x4xf32>, vector<1x48x4xf32> -> vector<1x48x4xf32>
    %cst_23 = arith.constant 0.000000e+00 : f32
    "tpu.trace_stop"() : () -> ()
    %20 = vector.broadcast %cst_23 : f32 to vector<1x16x32xf32>
    %21 = vector.extract_strided_slice %19 {offsets = [0, 0, 0], sizes = [1, 16, 4], strides = [1, 1, 1]} : vector<1x48x4xf32> to vector<1x16x4xf32>
    %c0_24 = arith.constant 0 : index
    %c0_25 = arith.constant 0 : index
    %c0_26 = arith.constant 0 : index
    %22 = vector.load %arg4[%c0_24, %c0_25, %c0_26] : memref<3x4x32xf32, #tpu.memory_space<vmem>>, vector<1x4x32xf32>
    %23 = vector.shape_cast %22 : vector<1x4x32xf32> to vector<4x32xf32>
    "tpu.trace_start"() <{level = 10 : i32, message = "bif,fo->bio"}> : () -> ()
    %cst_27 = arith.constant dense<0.000000e+00> : vector<1x16x32xf32>
    %24 = tpu.matmul %21, %23, %cst_27 {dimension_numbers = #tpu.dot_dimension_numbers<[2], [0], [0, 1], [1], [0, 0, 0, 1, 1, 1], [], []>} : vector<1x16x4xf32>, vector<4x32xf32>, vector<1x16x32xf32> -> vector<1x16x32xf32>
    "tpu.trace_stop"() : () -> ()
    %25 = arith.addf %20, %24 : vector<1x16x32xf32>
    %26 = vector.extract_strided_slice %19 {offsets = [0, 16, 0], sizes = [1, 16, 4], strides = [1, 1, 1]} : vector<1x48x4xf32> to vector<1x16x4xf32>
    %c1_28 = arith.constant 1 : index
    %c0_29 = arith.constant 0 : index
    %c0_30 = arith.constant 0 : index
    %27 = vector.load %arg4[%c1_28, %c0_29, %c0_30] : memref<3x4x32xf32, #tpu.memory_space<vmem>>, vector<1x4x32xf32>
    %28 = vector.shape_cast %27 : vector<1x4x32xf32> to vector<4x32xf32>
    "tpu.trace_start"() <{level = 10 : i32, message = "bif,fo->bio"}> : () -> ()
    %cst_31 = arith.constant dense<0.000000e+00> : vector<1x16x32xf32>
    %29 = tpu.matmul %26, %28, %cst_31 {dimension_numbers = #tpu.dot_dimension_numbers<[2], [0], [0, 1], [1], [0, 0, 0, 1, 1, 1], [], []>} : vector<1x16x4xf32>, vector<4x32xf32>, vector<1x16x32xf32> -> vector<1x16x32xf32>
    "tpu.trace_stop"() : () -> ()
    %30 = arith.addf %25, %29 : vector<1x16x32xf32>
    %31 = vector.extract_strided_slice %19 {offsets = [0, 32, 0], sizes = [1, 16, 4], strides = [1, 1, 1]} : vector<1x48x4xf32> to vector<1x16x4xf32>
    %c2_32 = arith.constant 2 : index
    %c0_33 = arith.constant 0 : index
    %c0_34 = arith.constant 0 : index
    %32 = vector.load %arg4[%c2_32, %c0_33, %c0_34] : memref<3x4x32xf32, #tpu.memory_space<vmem>>, vector<1x4x32xf32>
    %33 = vector.shape_cast %32 : vector<1x4x32xf32> to vector<4x32xf32>
    "tpu.trace_start"() <{level = 10 : i32, message = "bif,fo->bio"}> : () -> ()
    %cst_35 = arith.constant dense<0.000000e+00> : vector<1x16x32xf32>
    %34 = tpu.matmul %31, %33, %cst_35 {dimension_numbers = #tpu.dot_dimension_numbers<[2], [0], [0, 1], [1], [0, 0, 0, 1, 1, 1], [], []>} : vector<1x16x4xf32>, vector<4x32xf32>, vector<1x16x32xf32> -> vector<1x16x32xf32>
    "tpu.trace_stop"() : () -> ()
    %35 = arith.addf %30, %34 : vector<1x16x32xf32>
    %cst_36 = arith.constant 0.000000e+00 : f32
    %36 = vector.broadcast %cst_36 : f32 to vector<1x16x32xf32>
    %37 = arith.maximumf %35, %36 : vector<1x16x32xf32>
    %c0_37 = arith.constant 0 : index
    %c0_38 = arith.constant 0 : index
    %c0_39 = arith.constant 0 : index
    %c0_40 = arith.constant 0 : index
    %38 = vector.load %arg5[%c0_37, %c0_38, %c0_39, %c0_40] : memref<1x8x16x32xf32, #tpu.memory_space<vmem>>, vector<1x1x16x32xf32>
    %39 = vector.shape_cast %38 : vector<1x1x16x32xf32> to vector<1x16x32xf32>
    %40 = vector.shape_cast %37 : vector<1x16x32xf32> to vector<1x1x16x32xf32>
    tpu.vector_store %arg5[%c0_37, %c0_38, %c0_39, %c0_40], %40 {strides = array<i32>} : memref<1x8x16x32xf32, #tpu.memory_space<vmem>>, vector<1x1x16x32xf32>,
    %c0_41 = arith.constant 0 : index
    %c1_42 = arith.constant 1 : index
    %c0_43 = arith.constant 0 : index
    %c0_44 = arith.constant 0 : index
    %41 = vector.load %arg1[%c0_41, %c1_42, %c0_43, %c0_44] : memref<1x8x16x4xf32, #tpu.memory_space<vmem>>, vector<1x1x16x4xf32>
    %42 = vector.shape_cast %41 : vector<1x1x16x4xf32> to vector<1x16x4xf32>
    "tpu.trace_start"() <{level = 10 : i32, message = "bpj,bjf->bpf"}> : () -> ()
    %cst_45 = arith.constant dense<0.000000e+00> : vector<1x48x4xf32>
    %43 = tpu.matmul %16, %42, %cst_45 {dimension_numbers = #tpu.dot_dimension_numbers<[2], [1], [1], [2], [0, 0, 0, 1, 1, 2], [0], [0]>} : vector<1x48x16xf32>, vector<1x16x4xf32>, vector<1x48x4xf32> -> vector<1x48x4xf32>
    %cst_46 = arith.constant 0.000000e+00 : f32
    "tpu.trace_stop"() : () -> ()
    %44 = vector.broadcast %cst_46 : f32 to vector<1x16x32xf32>
    %45 = vector.extract_strided_slice %43 {offsets = [0, 0, 0], sizes = [1, 16, 4], strides = [1, 1, 1]} : vector<1x48x4xf32> to vector<1x16x4xf32>
    %c0_47 = arith.constant 0 : index
    %c0_48 = arith.constant 0 : index
    %c0_49 = arith.constant 0 : index
    %46 = vector.load %arg4[%c0_47, %c0_48, %c0_49] : memref<3x4x32xf32, #tpu.memory_space<vmem>>, vector<1x4x32xf32>
    %47 = vector.shape_cast %46 : vector<1x4x32xf32> to vector<4x32xf32>
    "tpu.trace_start"() <{level = 10 : i32, message = "bif,fo->bio"}> : () -> ()
    %cst_50 = arith.constant dense<0.000000e+00> : vector<1x16x32xf32>
    %48 = tpu.matmul %45, %47, %cst_50 {dimension_numbers = #tpu.dot_dimension_numbers<[2], [0], [0, 1], [1], [0, 0, 0, 1, 1, 1], [], []>} : vector<1x16x4xf32>, vector<4x32xf32>, vector<1x16x32xf32> -> vector<1x16x32xf32>
    "tpu.trace_stop"() : () -> ()
    %49 = arith.addf %44, %48 : vector<1x16x32xf32>
    %50 = vector.extract_strided_slice %43 {offsets = [0, 16, 0], sizes = [1, 16, 4], strides = [1, 1, 1]} : vector<1x48x4xf32> to vector<1x16x4xf32>
    %c1_51 = arith.constant 1 : index
    %c0_52 = arith.constant 0 : index
    %c0_53 = arith.constant 0 : index
    %51 = vector.load %arg4[%c1_51, %c0_52, %c0_53] : memref<3x4x32xf32, #tpu.memory_space<vmem>>, vector<1x4x32xf32>
    %52 = vector.shape_cast %51 : vector<1x4x32xf32> to vector<4x32xf32>
    "tpu.trace_start"() <{level = 10 : i32, message = "bif,fo->bio"}> : () -> ()
    %cst_54 = arith.constant dense<0.000000e+00> : vector<1x16x32xf32>
    %53 = tpu.matmul %50, %52, %cst_54 {dimension_numbers = #tpu.dot_dimension_numbers<[2], [0], [0, 1], [1], [0, 0, 0, 1, 1, 1], [], []>} : vector<1x16x4xf32>, vector<4x32xf32>, vector<1x16x32xf32> -> vector<1x16x32xf32>
    "tpu.trace_stop"() : () -> ()
    %54 = arith.addf %49, %53 : vector<1x16x32xf32>
    %55 = vector.extract_strided_slice %43 {offsets = [0, 32, 0], sizes = [1, 16, 4], strides = [1, 1, 1]} : vector<1x48x4xf32> to vector<1x16x4xf32>
    %c2_55 = arith.constant 2 : index
    %c0_56 = arith.constant 0 : index
    %c0_57 = arith.constant 0 : index
    %56 = vector.load %arg4[%c2_55, %c0_56, %c0_57] : memref<3x4x32xf32, #tpu.memory_space<vmem>>, vector<1x4x32xf32>
    %57 = vector.shape_cast %56 : vector<1x4x32xf32> to vector<4x32xf32>
    "tpu.trace_start"() <{level = 10 : i32, message = "bif,fo->bio"}> : () -> ()
    %cst_58 = arith.constant dense<0.000000e+00> : vector<1x16x32xf32>
    %58 = tpu.matmul %55, %57, %cst_58 {dimension_numbers = #tpu.dot_dimension_numbers<[2], [0], [0, 1], [1], [0, 0, 0, 1, 1, 1], [], []>} : vector<1x16x4xf32>, vector<4x32xf32>, vector<1x16x32xf32> -> vector<1x16x32xf32>
    "tpu.trace_stop"() : () -> ()
    %59 = arith.addf %54, %58 : vector<1x16x32xf32>
    %cst_59 = arith.constant 0.000000e+00 : f32
    %60 = vector.broadcast %cst_59 : f32 to vector<1x16x32xf32>
    %61 = arith.maximumf %59, %60 : vector<1x16x32xf32>
    %c0_60 = arith.constant 0 : index
    %c1_61 = arith.constant 1 : index
    %c0_62 = arith.constant 0 : index
    %c0_63 = arith.constant 0 : index
    %62 = vector.load %arg5[%c0_60, %c1_61, %c0_62, %c0_63] : memref<1x8x16x32xf32, #tpu.memory_space<vmem>>, vector<1x1x16x32xf32>
    %63 = vector.shape_cast %62 : vector<1x1x16x32xf32> to vector<1x16x32xf32>
    %64 = vector.shape_cast %61 : vector<1x16x32xf32> to vector<1x1x16x32xf32>
    tpu.vector_store %arg5[%c0_60, %c1_61, %c0_62, %c0_63], %64 {strides = array<i32>} : memref<1x8x16x32xf32, #tpu.memory_space<vmem>>, vector<1x1x16x32xf32>,
    %c0_64 = arith.constant 0 : index
    %c2_65 = arith.constant 2 : index
    %c0_66 = arith.constant 0 : index
    %c0_67 = arith.constant 0 : index
    %65 = vector.load %arg1[%c0_64, %c2_65, %c0_66, %c0_67] : memref<1x8x16x4xf32, #tpu.memory_space<vmem>>, vector<1x1x16x4xf32>
    %66 = vector.shape_cast %65 : vector<1x1x16x4xf32> to vector<1x16x4xf32>
    "tpu.trace_start"() <{level = 10 : i32, message = "bpj,bjf->bpf"}> : () -> ()
    %cst_68 = arith.constant dense<0.000000e+00> : vector<1x48x4xf32>
    %67 = tpu.matmul %16, %66, %cst_68 {dimension_numbers = #tpu.dot_dimension_numbers<[2], [1], [1], [2], [0, 0, 0, 1, 1, 2], [0], [0]>} : vector<1x48x16xf32>, vector<1x16x4xf32>, vector<1x48x4xf32> -> vector<1x48x4xf32>
    %cst_69 = arith.constant 0.000000e+00 : f32
    "tpu.trace_stop"() : () -> ()
    %68 = vector.broadcast %cst_69 : f32 to vector<1x16x32xf32>
    %69 = vector.extract_strided_slice %67 {offsets = [0, 0, 0], sizes = [1, 16, 4], strides = [1, 1, 1]} : vector<1x48x4xf32> to vector<1x16x4xf32>
    %c0_70 = arith.constant 0 : index
    %c0_71 = arith.constant 0 : index
    %c0_72 = arith.constant 0 : index
    %70 = vector.load %arg4[%c0_70, %c0_71, %c0_72] : memref<3x4x32xf32, #tpu.memory_space<vmem>>, vector<1x4x32xf32>
    %71 = vector.shape_cast %70 : vector<1x4x32xf32> to vector<4x32xf32>
    "tpu.trace_start"() <{level = 10 : i32, message = "bif,fo->bio"}> : () -> ()
    %cst_73 = arith.constant dense<0.000000e+00> : vector<1x16x32xf32>
    %72 = tpu.matmul %69, %71, %cst_73 {dimension_numbers = #tpu.dot_dimension_numbers<[2], [0], [0, 1], [1], [0, 0, 0, 1, 1, 1], [], []>} : vector<1x16x4xf32>, vector<4x32xf32>, vector<1x16x32xf32> -> vector<1x16x32xf32>
    "tpu.trace_stop"() : () -> ()
    %73 = arith.addf %68, %72 : vector<1x16x32xf32>
    %74 = vector.extract_strided_slice %67 {offsets = [0, 16, 0], sizes = [1, 16, 4], strides = [1, 1, 1]} : vector<1x48x4xf32> to vector<1x16x4xf32>
    %c1_74 = arith.constant 1 : index
    %c0_75 = arith.constant 0 : index
    %c0_76 = arith.constant 0 : index
    %75 = vector.load %arg4[%c1_74, %c0_75, %c0_76] : memref<3x4x32xf32, #tpu.memory_space<vmem>>, vector<1x4x32xf32>
    %76 = vector.shape_cast %75 : vector<1x4x32xf32> to vector<4x32xf32>
    "tpu.trace_start"() <{level = 10 : i32, message = "bif,fo->bio"}> : () -> ()
    %cst_77 = arith.constant dense<0.000000e+00> : vector<1x16x32xf32>
    %77 = tpu.matmul %74, %76, %cst_77 {dimension_numbers = #tpu.dot_dimension_numbers<[2], [0], [0, 1], [1], [0, 0, 0, 1, 1, 1], [], []>} : vector<1x16x4xf32>, vector<4x32xf32>, vector<1x16x32xf32> -> vector<1x16x32xf32>
    "tpu.trace_stop"() : () -> ()
    %78 = arith.addf %73, %77 : vector<1x16x32xf32>
    %79 = vector.extract_strided_slice %67 {offsets = [0, 32, 0], sizes = [1, 16, 4], strides = [1, 1, 1]} : vector<1x48x4xf32> to vector<1x16x4xf32>
    %c2_78 = arith.constant 2 : index
    %c0_79 = arith.constant 0 : index
    %c0_80 = arith.constant 0 : index
    %80 = vector.load %arg4[%c2_78, %c0_79, %c0_80] : memref<3x4x32xf32, #tpu.memory_space<vmem>>, vector<1x4x32xf32>
    %81 = vector.shape_cast %80 : vector<1x4x32xf32> to vector<4x32xf32>
    "tpu.trace_start"() <{level = 10 : i32, message = "bif,fo->bio"}> : () -> ()
    %cst_81 = arith.constant dense<0.000000e+00> : vector<1x16x32xf32>
    %82 = tpu.matmul %79, %81, %cst_81 {dimension_numbers = #tpu.dot_dimension_numbers<[2], [0], [0, 1], [1], [0, 0, 0, 1, 1, 1], [], []>} : vector<1x16x4xf32>, vector<4x32xf32>, vector<1x16x32xf32> -> vector<1x16x32xf32>
    "tpu.trace_stop"() : () -> ()
    %83 = arith.addf %78, %82 : vector<1x16x32xf32>
    %cst_82 = arith.constant 0.000000e+00 : f32
    %84 = vector.broadcast %cst_82 : f32 to vector<1x16x32xf32>
    %85 = arith.maximumf %83, %84 : vector<1x16x32xf32>
    %c0_83 = arith.constant 0 : index
    %c2_84 = arith.constant 2 : index
    %c0_85 = arith.constant 0 : index
    %c0_86 = arith.constant 0 : index
    %86 = vector.load %arg5[%c0_83, %c2_84, %c0_85, %c0_86] : memref<1x8x16x32xf32, #tpu.memory_space<vmem>>, vector<1x1x16x32xf32>
    %87 = vector.shape_cast %86 : vector<1x1x16x32xf32> to vector<1x16x32xf32>
    %88 = vector.shape_cast %85 : vector<1x16x32xf32> to vector<1x1x16x32xf32>
    tpu.vector_store %arg5[%c0_83, %c2_84, %c0_85, %c0_86], %88 {strides = array<i32>} : memref<1x8x16x32xf32, #tpu.memory_space<vmem>>, vector<1x1x16x32xf32>,
    %c0_87 = arith.constant 0 : index
    %c3 = arith.constant 3 : index
    %c0_88 = arith.constant 0 : index
    %c0_89 = arith.constant 0 : index
    %89 = vector.load %arg1[%c0_87, %c3, %c0_88, %c0_89] : memref<1x8x16x4xf32, #tpu.memory_space<vmem>>, vector<1x1x16x4xf32>
    %90 = vector.shape_cast %89 : vector<1x1x16x4xf32> to vector<1x16x4xf32>
    "tpu.trace_start"() <{level = 10 : i32, message = "bpj,bjf->bpf"}> : () -> ()
    %cst_90 = arith.constant dense<0.000000e+00> : vector<1x48x4xf32>
    %91 = tpu.matmul %16, %90, %cst_90 {dimension_numbers = #tpu.dot_dimension_numbers<[2], [1], [1], [2], [0, 0, 0, 1, 1, 2], [0], [0]>} : vector<1x48x16xf32>, vector<1x16x4xf32>, vector<1x48x4xf32> -> vector<1x48x4xf32>
    %cst_91 = arith.constant 0.000000e+00 : f32
    "tpu.trace_stop"() : () -> ()
    %92 = vector.broadcast %cst_91 : f32 to vector<1x16x32xf32>
    %93 = vector.extract_strided_slice %91 {offsets = [0, 0, 0], sizes = [1, 16, 4], strides = [1, 1, 1]} : vector<1x48x4xf32> to vector<1x16x4xf32>
    %c0_92 = arith.constant 0 : index
    %c0_93 = arith.constant 0 : index
    %c0_94 = arith.constant 0 : index
    %94 = vector.load %arg4[%c0_92, %c0_93, %c0_94] : memref<3x4x32xf32, #tpu.memory_space<vmem>>, vector<1x4x32xf32>
    %95 = vector.shape_cast %94 : vector<1x4x32xf32> to vector<4x32xf32>
    "tpu.trace_start"() <{level = 10 : i32, message = "bif,fo->bio"}> : () -> ()
    %cst_95 = arith.constant dense<0.000000e+00> : vector<1x16x32xf32>
    %96 = tpu.matmul %93, %95, %cst_95 {dimension_numbers = #tpu.dot_dimension_numbers<[2], [0], [0, 1], [1], [0, 0, 0, 1, 1, 1], [], []>} : vector<1x16x4xf32>, vector<4x32xf32>, vector<1x16x32xf32> -> vector<1x16x32xf32>
    "tpu.trace_stop"() : () -> ()
    %97 = arith.addf %92, %96 : vector<1x16x32xf32>
    %98 = vector.extract_strided_slice %91 {offsets = [0, 16, 0], sizes = [1, 16, 4], strides = [1, 1, 1]} : vector<1x48x4xf32> to vector<1x16x4xf32>
    %c1_96 = arith.constant 1 : index
    %c0_97 = arith.constant 0 : index
    %c0_98 = arith.constant 0 : index
    %99 = vector.load %arg4[%c1_96, %c0_97, %c0_98] : memref<3x4x32xf32, #tpu.memory_space<vmem>>, vector<1x4x32xf32>
    %100 = vector.shape_cast %99 : vector<1x4x32xf32> to vector<4x32xf32>
    "tpu.trace_start"() <{level = 10 : i32, message = "bif,fo->bio"}> : () -> ()
    %cst_99 = arith.constant dense<0.000000e+00> : vector<1x16x32xf32>
    %101 = tpu.matmul %98, %100, %cst_99 {dimension_numbers = #tpu.dot_dimension_numbers<[2], [0], [0, 1], [1], [0, 0, 0, 1, 1, 1], [], []>} : vector<1x16x4xf32>, vector<4x32xf32>, vector<1x16x32xf32> -> vector<1x16x32xf32>
    "tpu.trace_stop"() : () -> ()
    %102 = arith.addf %97, %101 : vector<1x16x32xf32>
    %103 = vector.extract_strided_slice %91 {offsets = [0, 32, 0], sizes = [1, 16, 4], strides = [1, 1, 1]} : vector<1x48x4xf32> to vector<1x16x4xf32>
    %c2_100 = arith.constant 2 : index
    %c0_101 = arith.constant 0 : index
    %c0_102 = arith.constant 0 : index
    %104 = vector.load %arg4[%c2_100, %c0_101, %c0_102] : memref<3x4x32xf32, #tpu.memory_space<vmem>>, vector<1x4x32xf32>
    %105 = vector.shape_cast %104 : vector<1x4x32xf32> to vector<4x32xf32>
    "tpu.trace_start"() <{level = 10 : i32, message = "bif,fo->bio"}> : () -> ()
    %cst_103 = arith.constant dense<0.000000e+00> : vector<1x16x32xf32>
    %106 = tpu.matmul %103, %105, %cst_103 {dimension_numbers = #tpu.dot_dimension_numbers<[2], [0], [0, 1], [1], [0, 0, 0, 1, 1, 1], [], []>} : vector<1x16x4xf32>, vector<4x32xf32>, vector<1x16x32xf32> -> vector<1x16x32xf32>
    "tpu.trace_stop"() : () -> ()
    %107 = arith.addf %102, %106 : vector<1x16x32xf32>
    %cst_104 = arith.constant 0.000000e+00 : f32
    %108 = vector.broadcast %cst_104 : f32 to vector<1x16x32xf32>
    %109 = arith.maximumf %107, %108 : vector<1x16x32xf32>
    %c0_105 = arith.constant 0 : index
    %c3_106 = arith.constant 3 : index
    %c0_107 = arith.constant 0 : index
    %c0_108 = arith.constant 0 : index
    %110 = vector.load %arg5[%c0_105, %c3_106, %c0_107, %c0_108] : memref<1x8x16x32xf32, #tpu.memory_space<vmem>>, vector<1x1x16x32xf32>
    %111 = vector.shape_cast %110 : vector<1x1x16x32xf32> to vector<1x16x32xf32>
    %112 = vector.shape_cast %109 : vector<1x16x32xf32> to vector<1x1x16x32xf32>
    tpu.vector_store %arg5[%c0_105, %c3_106, %c0_107, %c0_108], %112 {strides = array<i32>} : memref<1x8x16x32xf32, #tpu.memory_space<vmem>>, vector<1x1x16x32xf32>,
    %c0_109 = arith.constant 0 : index
    %c4 = arith.constant 4 : index
    %c0_110 = arith.constant 0 : index
    %c0_111 = arith.constant 0 : index
    %113 = vector.load %arg1[%c0_109, %c4, %c0_110, %c0_111] : memref<1x8x16x4xf32, #tpu.memory_space<vmem>>, vector<1x1x16x4xf32>
    %114 = vector.shape_cast %113 : vector<1x1x16x4xf32> to vector<1x16x4xf32>
    "tpu.trace_start"() <{level = 10 : i32, message = "bpj,bjf->bpf"}> : () -> ()
    %cst_112 = arith.constant dense<0.000000e+00> : vector<1x48x4xf32>
    %115 = tpu.matmul %16, %114, %cst_112 {dimension_numbers = #tpu.dot_dimension_numbers<[2], [1], [1], [2], [0, 0, 0, 1, 1, 2], [0], [0]>} : vector<1x48x16xf32>, vector<1x16x4xf32>, vector<1x48x4xf32> -> vector<1x48x4xf32>
    %cst_113 = arith.constant 0.000000e+00 : f32
    "tpu.trace_stop"() : () -> ()
    %116 = vector.broadcast %cst_113 : f32 to vector<1x16x32xf32>
    %117 = vector.extract_strided_slice %115 {offsets = [0, 0, 0], sizes = [1, 16, 4], strides = [1, 1, 1]} : vector<1x48x4xf32> to vector<1x16x4xf32>
    %c0_114 = arith.constant 0 : index
    %c0_115 = arith.constant 0 : index
    %c0_116 = arith.constant 0 : index
    %118 = vector.load %arg4[%c0_114, %c0_115, %c0_116] : memref<3x4x32xf32, #tpu.memory_space<vmem>>, vector<1x4x32xf32>
    %119 = vector.shape_cast %118 : vector<1x4x32xf32> to vector<4x32xf32>
    "tpu.trace_start"() <{level = 10 : i32, message = "bif,fo->bio"}> : () -> ()
    %cst_117 = arith.constant dense<0.000000e+00> : vector<1x16x32xf32>
    %120 = tpu.matmul %117, %119, %cst_117 {dimension_numbers = #tpu.dot_dimension_numbers<[2], [0], [0, 1], [1], [0, 0, 0, 1, 1, 1], [], []>} : vector<1x16x4xf32>, vector<4x32xf32>, vector<1x16x32xf32> -> vector<1x16x32xf32>
    "tpu.trace_stop"() : () -> ()
    %121 = arith.addf %116, %120 : vector<1x16x32xf32>
    %122 = vector.extract_strided_slice %115 {offsets = [0, 16, 0], sizes = [1, 16, 4], strides = [1, 1, 1]} : vector<1x48x4xf32> to vector<1x16x4xf32>
    %c1_118 = arith.constant 1 : index
    %c0_119 = arith.constant 0 : index
    %c0_120 = arith.constant 0 : index
    %123 = vector.load %arg4[%c1_118, %c0_119, %c0_120] : memref<3x4x32xf32, #tpu.memory_space<vmem>>, vector<1x4x32xf32>
    %124 = vector.shape_cast %123 : vector<1x4x32xf32> to vector<4x32xf32>
    "tpu.trace_start"() <{level = 10 : i32, message = "bif,fo->bio"}> : () -> ()
    %cst_121 = arith.constant dense<0.000000e+00> : vector<1x16x32xf32>
    %125 = tpu.matmul %122, %124, %cst_121 {dimension_numbers = #tpu.dot_dimension_numbers<[2], [0], [0, 1], [1], [0, 0, 0, 1, 1, 1], [], []>} : vector<1x16x4xf32>, vector<4x32xf32>, vector<1x16x32xf32> -> vector<1x16x32xf32>
    "tpu.trace_stop"() : () -> ()
    %126 = arith.addf %121, %125 : vector<1x16x32xf32>
    %127 = vector.extract_strided_slice %115 {offsets = [0, 32, 0], sizes = [1, 16, 4], strides = [1, 1, 1]} : vector<1x48x4xf32> to vector<1x16x4xf32>
    %c2_122 = arith.constant 2 : index
    %c0_123 = arith.constant 0 : index
    %c0_124 = arith.constant 0 : index
    %128 = vector.load %arg4[%c2_122, %c0_123, %c0_124] : memref<3x4x32xf32, #tpu.memory_space<vmem>>, vector<1x4x32xf32>
    %129 = vector.shape_cast %128 : vector<1x4x32xf32> to vector<4x32xf32>
    "tpu.trace_start"() <{level = 10 : i32, message = "bif,fo->bio"}> : () -> ()
    %cst_125 = arith.constant dense<0.000000e+00> : vector<1x16x32xf32>
    %130 = tpu.matmul %127, %129, %cst_125 {dimension_numbers = #tpu.dot_dimension_numbers<[2], [0], [0, 1], [1], [0, 0, 0, 1, 1, 1], [], []>} : vector<1x16x4xf32>, vector<4x32xf32>, vector<1x16x32xf32> -> vector<1x16x32xf32>
    "tpu.trace_stop"() : () -> ()
    %131 = arith.addf %126, %130 : vector<1x16x32xf32>
    %cst_126 = arith.constant 0.000000e+00 : f32
    %132 = vector.broadcast %cst_126 : f32 to vector<1x16x32xf32>
    %133 = arith.maximumf %131, %132 : vector<1x16x32xf32>
    %c0_127 = arith.constant 0 : index
    %c4_128 = arith.constant 4 : index
    %c0_129 = arith.constant 0 : index
    %c0_130 = arith.constant 0 : index
    %134 = vector.load %arg5[%c0_127, %c4_128, %c0_129, %c0_130] : memref<1x8x16x32xf32, #tpu.memory_space<vmem>>, vector<1x1x16x32xf32>
    %135 = vector.shape_cast %134 : vector<1x1x16x32xf32> to vector<1x16x32xf32>
    %136 = vector.shape_cast %133 : vector<1x16x32xf32> to vector<1x1x16x32xf32>
    tpu.vector_store %arg5[%c0_127, %c4_128, %c0_129, %c0_130], %136 {strides = array<i32>} : memref<1x8x16x32xf32, #tpu.memory_space<vmem>>, vector<1x1x16x32xf32>,
    %c0_131 = arith.constant 0 : index
    %c5 = arith.constant 5 : index
    %c0_132 = arith.constant 0 : index
    %c0_133 = arith.constant 0 : index
    %137 = vector.load %arg1[%c0_131, %c5, %c0_132, %c0_133] : memref<1x8x16x4xf32, #tpu.memory_space<vmem>>, vector<1x1x16x4xf32>
    %138 = vector.shape_cast %137 : vector<1x1x16x4xf32> to vector<1x16x4xf32>
    "tpu.trace_start"() <{level = 10 : i32, message = "bpj,bjf->bpf"}> : () -> ()
    %cst_134 = arith.constant dense<0.000000e+00> : vector<1x48x4xf32>
    %139 = tpu.matmul %16, %138, %cst_134 {dimension_numbers = #tpu.dot_dimension_numbers<[2], [1], [1], [2], [0, 0, 0, 1, 1, 2], [0], [0]>} : vector<1x48x16xf32>, vector<1x16x4xf32>, vector<1x48x4xf32> -> vector<1x48x4xf32>
    %cst_135 = arith.constant 0.000000e+00 : f32
    "tpu.trace_stop"() : () -> ()
    %140 = vector.broadcast %cst_135 : f32 to vector<1x16x32xf32>
    %141 = vector.extract_strided_slice %139 {offsets = [0, 0, 0], sizes = [1, 16, 4], strides = [1, 1, 1]} : vector<1x48x4xf32> to vector<1x16x4xf32>
    %c0_136 = arith.constant 0 : index
    %c0_137 = arith.constant 0 : index
    %c0_138 = arith.constant 0 : index
    %142 = vector.load %arg4[%c0_136, %c0_137, %c0_138] : memref<3x4x32xf32, #tpu.memory_space<vmem>>, vector<1x4x32xf32>
    %143 = vector.shape_cast %142 : vector<1x4x32xf32> to vector<4x32xf32>
    "tpu.trace_start"() <{level = 10 : i32, message = "bif,fo->bio"}> : () -> ()
    %cst_139 = arith.constant dense<0.000000e+00> : vector<1x16x32xf32>
    %144 = tpu.matmul %141, %143, %cst_139 {dimension_numbers = #tpu.dot_dimension_numbers<[2], [0], [0, 1], [1], [0, 0, 0, 1, 1, 1], [], []>} : vector<1x16x4xf32>, vector<4x32xf32>, vector<1x16x32xf32> -> vector<1x16x32xf32>
    "tpu.trace_stop"() : () -> ()
    %145 = arith.addf %140, %144 : vector<1x16x32xf32>
    %146 = vector.extract_strided_slice %139 {offsets = [0, 16, 0], sizes = [1, 16, 4], strides = [1, 1, 1]} : vector<1x48x4xf32> to vector<1x16x4xf32>
    %c1_140 = arith.constant 1 : index
    %c0_141 = arith.constant 0 : index
    %c0_142 = arith.constant 0 : index
    %147 = vector.load %arg4[%c1_140, %c0_141, %c0_142] : memref<3x4x32xf32, #tpu.memory_space<vmem>>, vector<1x4x32xf32>
    %148 = vector.shape_cast %147 : vector<1x4x32xf32> to vector<4x32xf32>
    "tpu.trace_start"() <{level = 10 : i32, message = "bif,fo->bio"}> : () -> ()
    %cst_143 = arith.constant dense<0.000000e+00> : vector<1x16x32xf32>
    %149 = tpu.matmul %146, %148, %cst_143 {dimension_numbers = #tpu.dot_dimension_numbers<[2], [0], [0, 1], [1], [0, 0, 0, 1, 1, 1], [], []>} : vector<1x16x4xf32>, vector<4x32xf32>, vector<1x16x32xf32> -> vector<1x16x32xf32>
    "tpu.trace_stop"() : () -> ()
    %150 = arith.addf %145, %149 : vector<1x16x32xf32>
    %151 = vector.extract_strided_slice %139 {offsets = [0, 32, 0], sizes = [1, 16, 4], strides = [1, 1, 1]} : vector<1x48x4xf32> to vector<1x16x4xf32>
    %c2_144 = arith.constant 2 : index
    %c0_145 = arith.constant 0 : index
    %c0_146 = arith.constant 0 : index
    %152 = vector.load %arg4[%c2_144, %c0_145, %c0_146] : memref<3x4x32xf32, #tpu.memory_space<vmem>>, vector<1x4x32xf32>
    %153 = vector.shape_cast %152 : vector<1x4x32xf32> to vector<4x32xf32>
    "tpu.trace_start"() <{level = 10 : i32, message = "bif,fo->bio"}> : () -> ()
    %cst_147 = arith.constant dense<0.000000e+00> : vector<1x16x32xf32>
    %154 = tpu.matmul %151, %153, %cst_147 {dimension_numbers = #tpu.dot_dimension_numbers<[2], [0], [0, 1], [1], [0, 0, 0, 1, 1, 1], [], []>} : vector<1x16x4xf32>, vector<4x32xf32>, vector<1x16x32xf32> -> vector<1x16x32xf32>
    "tpu.trace_stop"() : () -> ()
    %155 = arith.addf %150, %154 : vector<1x16x32xf32>
    %cst_148 = arith.constant 0.000000e+00 : f32
    %156 = vector.broadcast %cst_148 : f32 to vector<1x16x32xf32>
    %157 = arith.maximumf %155, %156 : vector<1x16x32xf32>
    %c0_149 = arith.constant 0 : index
    %c5_150 = arith.constant 5 : index
    %c0_151 = arith.constant 0 : index
    %c0_152 = arith.constant 0 : index
    %158 = vector.load %arg5[%c0_149, %c5_150, %c0_151, %c0_152] : memref<1x8x16x32xf32, #tpu.memory_space<vmem>>, vector<1x1x16x32xf32>
    %159 = vector.shape_cast %158 : vector<1x1x16x32xf32> to vector<1x16x32xf32>
    %160 = vector.shape_cast %157 : vector<1x16x32xf32> to vector<1x1x16x32xf32>
    tpu.vector_store %arg5[%c0_149, %c5_150, %c0_151, %c0_152], %160 {strides = array<i32>} : memref<1x8x16x32xf32, #tpu.memory_space<vmem>>, vector<1x1x16x32xf32>,
    %c0_153 = arith.constant 0 : index
    %c6 = arith.constant 6 : index
    %c0_154 = arith.constant 0 : index
    %c0_155 = arith.constant 0 : index
    %161 = vector.load %arg1[%c0_153, %c6, %c0_154, %c0_155] : memref<1x8x16x4xf32, #tpu.memory_space<vmem>>, vector<1x1x16x4xf32>
    %162 = vector.shape_cast %161 : vector<1x1x16x4xf32> to vector<1x16x4xf32>
    "tpu.trace_start"() <{level = 10 : i32, message = "bpj,bjf->bpf"}> : () -> ()
    %cst_156 = arith.constant dense<0.000000e+00> : vector<1x48x4xf32>
    %163 = tpu.matmul %16, %162, %cst_156 {dimension_numbers = #tpu.dot_dimension_numbers<[2], [1], [1], [2], [0, 0, 0, 1, 1, 2], [0], [0]>} : vector<1x48x16xf32>, vector<1x16x4xf32>, vector<1x48x4xf32> -> vector<1x48x4xf32>
    %cst_157 = arith.constant 0.000000e+00 : f32
    "tpu.trace_stop"() : () -> ()
    %164 = vector.broadcast %cst_157 : f32 to vector<1x16x32xf32>
    %165 = vector.extract_strided_slice %163 {offsets = [0, 0, 0], sizes = [1, 16, 4], strides = [1, 1, 1]} : vector<1x48x4xf32> to vector<1x16x4xf32>
    %c0_158 = arith.constant 0 : index
    %c0_159 = arith.constant 0 : index
    %c0_160 = arith.constant 0 : index
    %166 = vector.load %arg4[%c0_158, %c0_159, %c0_160] : memref<3x4x32xf32, #tpu.memory_space<vmem>>, vector<1x4x32xf32>
    %167 = vector.shape_cast %166 : vector<1x4x32xf32> to vector<4x32xf32>
    "tpu.trace_start"() <{level = 10 : i32, message = "bif,fo->bio"}> : () -> ()
    %cst_161 = arith.constant dense<0.000000e+00> : vector<1x16x32xf32>
    %168 = tpu.matmul %165, %167, %cst_161 {dimension_numbers = #tpu.dot_dimension_numbers<[2], [0], [0, 1], [1], [0, 0, 0, 1, 1, 1], [], []>} : vector<1x16x4xf32>, vector<4x32xf32>, vector<1x16x32xf32> -> vector<1x16x32xf32>
    "tpu.trace_stop"() : () -> ()
    %169 = arith.addf %164, %168 : vector<1x16x32xf32>
    %170 = vector.extract_strided_slice %163 {offsets = [0, 16, 0], sizes = [1, 16, 4], strides = [1, 1, 1]} : vector<1x48x4xf32> to vector<1x16x4xf32>
    %c1_162 = arith.constant 1 : index
    %c0_163 = arith.constant 0 : index
    %c0_164 = arith.constant 0 : index
    %171 = vector.load %arg4[%c1_162, %c0_163, %c0_164] : memref<3x4x32xf32, #tpu.memory_space<vmem>>, vector<1x4x32xf32>
    %172 = vector.shape_cast %171 : vector<1x4x32xf32> to vector<4x32xf32>
    "tpu.trace_start"() <{level = 10 : i32, message = "bif,fo->bio"}> : () -> ()
    %cst_165 = arith.constant dense<0.000000e+00> : vector<1x16x32xf32>
    %173 = tpu.matmul %170, %172, %cst_165 {dimension_numbers = #tpu.dot_dimension_numbers<[2], [0], [0, 1], [1], [0, 0, 0, 1, 1, 1], [], []>} : vector<1x16x4xf32>, vector<4x32xf32>, vector<1x16x32xf32> -> vector<1x16x32xf32>
    "tpu.trace_stop"() : () -> ()
    %174 = arith.addf %169, %173 : vector<1x16x32xf32>
    %175 = vector.extract_strided_slice %163 {offsets = [0, 32, 0], sizes = [1, 16, 4], strides = [1, 1, 1]} : vector<1x48x4xf32> to vector<1x16x4xf32>
    %c2_166 = arith.constant 2 : index
    %c0_167 = arith.constant 0 : index
    %c0_168 = arith.constant 0 : index
    %176 = vector.load %arg4[%c2_166, %c0_167, %c0_168] : memref<3x4x32xf32, #tpu.memory_space<vmem>>, vector<1x4x32xf32>
    %177 = vector.shape_cast %176 : vector<1x4x32xf32> to vector<4x32xf32>
    "tpu.trace_start"() <{level = 10 : i32, message = "bif,fo->bio"}> : () -> ()
    %cst_169 = arith.constant dense<0.000000e+00> : vector<1x16x32xf32>
    %178 = tpu.matmul %175, %177, %cst_169 {dimension_numbers = #tpu.dot_dimension_numbers<[2], [0], [0, 1], [1], [0, 0, 0, 1, 1, 1], [], []>} : vector<1x16x4xf32>, vector<4x32xf32>, vector<1x16x32xf32> -> vector<1x16x32xf32>
    "tpu.trace_stop"() : () -> ()
    %179 = arith.addf %174, %178 : vector<1x16x32xf32>
    %cst_170 = arith.constant 0.000000e+00 : f32
    %180 = vector.broadcast %cst_170 : f32 to vector<1x16x32xf32>
    %181 = arith.maximumf %179, %180 : vector<1x16x32xf32>
    %c0_171 = arith.constant 0 : index
    %c6_172 = arith.constant 6 : index
    %c0_173 = arith.constant 0 : index
    %c0_174 = arith.constant 0 : index
    %182 = vector.load %arg5[%c0_171, %c6_172, %c0_173, %c0_174] : memref<1x8x16x32xf32, #tpu.memory_space<vmem>>, vector<1x1x16x32xf32>
    %183 = vector.shape_cast %182 : vector<1x1x16x32xf32> to vector<1x16x32xf32>
    %184 = vector.shape_cast %181 : vector<1x16x32xf32> to vector<1x1x16x32xf32>
    tpu.vector_store %arg5[%c0_171, %c6_172, %c0_173, %c0_174], %184 {strides = array<i32>} : memref<1x8x16x32xf32, #tpu.memory_space<vmem>>, vector<1x1x16x32xf32>,
    %c0_175 = arith.constant 0 : index
    %c7 = arith.constant 7 : index
    %c0_176 = arith.constant 0 : index
    %c0_177 = arith.constant 0 : index
    %185 = vector.load %arg1[%c0_175, %c7, %c0_176, %c0_177] : memref<1x8x16x4xf32, #tpu.memory_space<vmem>>, vector<1x1x16x4xf32>
    %186 = vector.shape_cast %185 : vector<1x1x16x4xf32> to vector<1x16x4xf32>
    "tpu.trace_start"() <{level = 10 : i32, message = "bpj,bjf->bpf"}> : () -> ()
    %cst_178 = arith.constant dense<0.000000e+00> : vector<1x48x4xf32>
    %187 = tpu.matmul %16, %186, %cst_178 {dimension_numbers = #tpu.dot_dimension_numbers<[2], [1], [1], [2], [0, 0, 0, 1, 1, 2], [0], [0]>} : vector<1x48x16xf32>, vector<1x16x4xf32>, vector<1x48x4xf32> -> vector<1x48x4xf32>
    %cst_179 = arith.constant 0.000000e+00 : f32
    "tpu.trace_stop"() : () -> ()
    %188 = vector.broadcast %cst_179 : f32 to vector<1x16x32xf32>
    %189 = vector.extract_strided_slice %187 {offsets = [0, 0, 0], sizes = [1, 16, 4], strides = [1, 1, 1]} : vector<1x48x4xf32> to vector<1x16x4xf32>
    %c0_180 = arith.constant 0 : index
    %c0_181 = arith.constant 0 : index
    %c0_182 = arith.constant 0 : index
    %190 = vector.load %arg4[%c0_180, %c0_181, %c0_182] : memref<3x4x32xf32, #tpu.memory_space<vmem>>, vector<1x4x32xf32>
    %191 = vector.shape_cast %190 : vector<1x4x32xf32> to vector<4x32xf32>
    "tpu.trace_start"() <{level = 10 : i32, message = "bif,fo->bio"}> : () -> ()
    %cst_183 = arith.constant dense<0.000000e+00> : vector<1x16x32xf32>
    %192 = tpu.matmul %189, %191, %cst_183 {dimension_numbers = #tpu.dot_dimension_numbers<[2], [0], [0, 1], [1], [0, 0, 0, 1, 1, 1], [], []>} : vector<1x16x4xf32>, vector<4x32xf32>, vector<1x16x32xf32> -> vector<1x16x32xf32>
    "tpu.trace_stop"() : () -> ()
    %193 = arith.addf %188, %192 : vector<1x16x32xf32>
    %194 = vector.extract_strided_slice %187 {offsets = [0, 16, 0], sizes = [1, 16, 4], strides = [1, 1, 1]} : vector<1x48x4xf32> to vector<1x16x4xf32>
    %c1_184 = arith.constant 1 : index
    %c0_185 = arith.constant 0 : index
    %c0_186 = arith.constant 0 : index
    %195 = vector.load %arg4[%c1_184, %c0_185, %c0_186] : memref<3x4x32xf32, #tpu.memory_space<vmem>>, vector<1x4x32xf32>
    %196 = vector.shape_cast %195 : vector<1x4x32xf32> to vector<4x32xf32>
    "tpu.trace_start"() <{level = 10 : i32, message = "bif,fo->bio"}> : () -> ()
    %cst_187 = arith.constant dense<0.000000e+00> : vector<1x16x32xf32>
    %197 = tpu.matmul %194, %196, %cst_187 {dimension_numbers = #tpu.dot_dimension_numbers<[2], [0], [0, 1], [1], [0, 0, 0, 1, 1, 1], [], []>} : vector<1x16x4xf32>, vector<4x32xf32>, vector<1x16x32xf32> -> vector<1x16x32xf32>
    "tpu.trace_stop"() : () -> ()
    %198 = arith.addf %193, %197 : vector<1x16x32xf32>
    %199 = vector.extract_strided_slice %187 {offsets = [0, 32, 0], sizes = [1, 16, 4], strides = [1, 1, 1]} : vector<1x48x4xf32> to vector<1x16x4xf32>
    %c2_188 = arith.constant 2 : index
    %c0_189 = arith.constant 0 : index
    %c0_190 = arith.constant 0 : index
    %200 = vector.load %arg4[%c2_188, %c0_189, %c0_190] : memref<3x4x32xf32, #tpu.memory_space<vmem>>, vector<1x4x32xf32>
    %201 = vector.shape_cast %200 : vector<1x4x32xf32> to vector<4x32xf32>
    "tpu.trace_start"() <{level = 10 : i32, message = "bif,fo->bio"}> : () -> ()
    %cst_191 = arith.constant dense<0.000000e+00> : vector<1x16x32xf32>
    %202 = tpu.matmul %199, %201, %cst_191 {dimension_numbers = #tpu.dot_dimension_numbers<[2], [0], [0, 1], [1], [0, 0, 0, 1, 1, 1], [], []>} : vector<1x16x4xf32>, vector<4x32xf32>, vector<1x16x32xf32> -> vector<1x16x32xf32>
    "tpu.trace_stop"() : () -> ()
    %203 = arith.addf %198, %202 : vector<1x16x32xf32>
    %cst_192 = arith.constant 0.000000e+00 : f32
    %204 = vector.broadcast %cst_192 : f32 to vector<1x16x32xf32>
    %205 = arith.maximumf %203, %204 : vector<1x16x32xf32>
    %c0_193 = arith.constant 0 : index
    %c7_194 = arith.constant 7 : index
    %c0_195 = arith.constant 0 : index
    %c0_196 = arith.constant 0 : index
    %206 = vector.load %arg5[%c0_193, %c7_194, %c0_195, %c0_196] : memref<1x8x16x32xf32, #tpu.memory_space<vmem>>, vector<1x1x16x32xf32>
    %207 = vector.shape_cast %206 : vector<1x1x16x32xf32> to vector<1x16x32xf32>
    %208 = vector.shape_cast %205 : vector<1x16x32xf32> to vector<1x1x16x32xf32>
    tpu.vector_store %arg5[%c0_193, %c7_194, %c0_195, %c0_196], %208 {strides = array<i32>} : memref<1x8x16x32xf32, #tpu.memory_space<vmem>>, vector<1x1x16x32xf32>,
    return
  }
  func.func @transform_0(%arg0: i32) -> (i32, i32, i32, i32) {
    %c0_i32 = arith.constant 0 : i32
    %c0_i32_0 = arith.constant 0 : i32
    %c0_i32_1 = arith.constant 0 : i32
    %c0_i32_2 = arith.constant 0 : i32
    return %arg0, %c0_i32, %c0_i32_0, %c0_i32_1 : i32, i32, i32, i32
  }
  func.func @transform_1(%arg0: i32) -> (i32, i32, i32) {
    %c0_i32 = arith.constant 0 : i32
    %c0_i32_0 = arith.constant 0 : i32
    %c0_i32_1 = arith.constant 0 : i32
    return %arg0, %c0_i32, %c0_i32_0 : i32, i32, i32
  }
  func.func @transform_2(%arg0: i32) -> (i32, i32, i32) {
    %c0_i32 = arith.constant 0 : i32
    %c0_i32_0 = arith.constant 0 : i32
    %c0_i32_1 = arith.constant 0 : i32
    %c0_i32_2 = arith.constant 0 : i32
    return %c0_i32, %c0_i32_0, %c0_i32_1 : i32, i32, i32
  }
  func.func @transform_3(%arg0: i32) -> (i32, i32, i32) {
    %c0_i32 = arith.constant 0 : i32
    %c0_i32_0 = arith.constant 0 : i32
    %c0_i32_1 = arith.constant 0 : i32
    %c0_i32_2 = arith.constant 0 : i32
    return %c0_i32, %c0_i32_0, %c0_i32_1 : i32, i32, i32
  }
  func.func @transform_4(%arg0: i32) -> (i32, i32, i32, i32) {
    %c0_i32 = arith.constant 0 : i32
    %c0_i32_0 = arith.constant 0 : i32
    %c0_i32_1 = arith.constant 0 : i32
    %c0_i32_2 = arith.constant 0 : i32
    return %arg0, %c0_i32, %c0_i32_0, %c0_i32_1 : i32, i32, i32, i32
  }
}

</mosaic_0001>

<bundles_post_ra>
// kernel: tpu_custom_call.1
= control target key start
LH: loop header
LB: loop body
LE: loop exit
PB: predicated region body
PF: predicated region fallthrough
CT: control target
= control target key end

     0   :  { %9 = vsyncpa [#allocation4], 0  ;;  %s4439_s0 = inlined_call_operand.vmem [shape: f32[2,8,16,4], index: 0, kind: input, shape index: {}]   ;;  %s4440_s1 = inlined_call_operand.vmem [shape: f32[2,16,16], index: 1, kind: input, shape index: {}]   ;;  %s4441_s2 = inlined_call_operand.vmem [shape: f32[3,16,16], index: 2, kind: input, shape index: {}]   ;;  %s4442_s3 = inlined_call_operand.vmem [shape: f32[3,4,32], index: 3, kind: input, shape index: {}]   ;;  %s4443_s4 = inlined_call_operand.hbm [shape: f32[2,8,16,32], index: 4, kind: output, shape index: {}]  }
   0x1   :  { %11 = vsyncpa [#allocation4 + $0x1], 0  ;;  %s3976_s15 = smov 0   ;;  %s3978_s16 = smov 0  }
   0x2   :  { %s3980_s17 = smov 0   ;;  %s3982_s18 = smov 0  }
   0x3 LB: > { %s3997_s19 = sadd.s32 4294967295, %s3946_s18   ;;  %s3234_s20 = sadd.s32 4294967294, %s3946_s18   ;;  %s3946_s18 = sphi %s3982_s18, %s4449_s18   ;;  %s3942_s17 = sphi %s3980_s17, %s4448_s17   ;;  %s3938_s16 = sphi %s3978_s16, %s4447_s16   ;;  %s3934_s15 = sphi %s3976_s15, %s4446_s15  }
   0x4   : > { %s4001_s21 = sadd.s32 1, %s3946_s18   ;;  %s118_s22 = sadd.s32 1, %s3942_s17 }
   0x5   : > { %s115_s23 = ssub.s32 %s3946_s18, %s4001_s21  ;;  %p128_p0 = scmp.ne.s32.totalorder %s3942_s17, %s3938_s16 }
   0x6   : > { %p116_p1 = scmp.eq.s32.totalorder %s115_s23, 0  ;;  %p129_p2 = scmp.eq.s32.totalorder %s3997_s19, 1 }
   0x7   : > { %p134_p3 = scmp.ne.s32.totalorder %s3938_s16, %s3934_s15  ;;  %p135_p4 = scmp.eq.s32.totalorder %s3234_s20, 1 }
   0x8   : > { %s4012_s24 = scalar_select %p116_p1, %s3942_s17, %s118_s22  }
   0x9   : > { %p4014_p5 = por %p129_p2, %p128_p0  ;;  %p4018_p6 = por %p135_p4, %p134_p3 }
   0xa   : > { %p3237_p7 = scmp.ge.s32.totalorder %s3946_s18, 1  ;;  %p175_p8 = scmp.lt.s32.totalorder %s3946_s18, 3 }
   0xc   : > { %p176_p9 = pnand %p3237_p7, %p175_p8 }
   0xd   : > { %p206_p10 = scmp.lt.s32.totalorder (!%p176_p9), %s3997_s19, 1  ;;  %v218_v0 = vld [vmem:[%s4441_s2] sm:$0xff] (!%p176_p9)  ;;  %v3243_v1 = vld [vmem:[%s4441_s2 + $0x10] sm:$0xff] (!%p176_p9)  ;;  %v219_v3 = vld [vmem:[%s4441_s2 + $0x8] sm:$0xff] (!%p176_p9)  ;;  %vm222_vm0 = vcmask (!%p176_p9), 130048   ;;  %vm370_vm1 = vcmask (!%p176_p9), 1043456  }
   0xe   : > { %179 = sbr.rel (%p176_p9) target bundleno = 860 (0x35c), region = 36  ;;  %v3245_v2 = vld [vmem:[%s4441_s2 + $0x20] sm:$0xff] (!%p176_p9)  ;;  %v3244_v4 = vld [vmem:[%s4441_s2 + $0x18] sm:$0xff] (!%p176_p9)  ;;  %v3246_v5 = vld [vmem:[%s4441_s2 + $0x28] sm:$0xff] (!%p176_p9)  ;;  %vm363_vm2 = vcmask (!%p176_p9), 31744   ;;  %vm623_vm3 = vcmask (!%p176_p9), 261120  }
   0xf   : > { %v3253_v23 = vld [vmem:[%s4442_s3 + $0x4] sm:$0xf] (!%p176_p9)  ;;  %v360_v24 = vld [vmem:[%s4442_s3] sm:$0xf] (!%p176_p9)  ;;  %v3260_v30 = vld [vmem:[%s4442_s3 + $0x8] sm:$0xf] (!%p176_p9) }
  0x10   : > { %3568 = vmatprep.subr.msk.mxu1 (!%p176_p9), %vm370_vm1, %v3253_v23  ;;  %v3272_v25 = vld [vmem:[%s4442_s3 + $0x4] sm:$0xf] (!%p176_p9)  ;;  %v724_v54 = vld [vmem:[%s4442_s3] sm:$0xf] (!%p176_p9)  ;;  %v3279_v63 = vld [vmem:[%s4442_s3 + $0x8] sm:$0xf] (!%p176_p9) }
  0x11   : > { %3569 = vmatpush3.msk.msra.mxu1 (!%p176_p9), %vm370_vm1, %v3253_v23  ;;  %s3418_s9 = sshll.u32 (!%p176_p9), %s3997_s19, 11 }
  0x12   : > { %3573 = vmatprep.subr.msk.mxu1 (!%p176_p9), %vm370_vm1, %v360_v24 }
  0x15   : > { %s207_s27 = scalar_select %p206_p10, %s3997_s19, 1 }
  0x17   : > { %s3416_s28 = sshll.u32 %s207_s27, 7  ;;  %s3417_s29 = sshll.u32 %s207_s27, 4 }
  0x18   : > { %s4038_s12 = scalar_lea.vmem %s4439_s0, %s3416_s28  ;;  %s215_s20 = scalar_lea.vmem %s4440_s1, %s3417_s29 }
  0x19   : > { %v245_v6 = vld [vmem:[%s4038_s12] sm:$0xff]  ;;  %v246_v7 = vld [vmem:[%s4038_s12 + $0x8] sm:$0xff]  ;;  %v3264_v33 = vld [vmem:[%s4038_s12 + $0x10] sm:$0xff] }
  0x1a   : > { %v216_v8 = vld [vmem:[%s215_s20] sm:$0xff]  ;;  %v3779_v9 = vpack.c.bf16 %v246_v7, %v245_v6  ;;  %v217_v11 = vld [vmem:[%s215_s20 + $0x8] sm:$0xff]  ;;  %v3265_v34 = vld [vmem:[%s4038_s12 + $0x18] sm:$0xff]  ;;  %s203_s20 = sand.u32 1, %s3938_s16  }
  0x1b   : > { %v220_v10 = vmul.f32 %v218_v0, %v216_v8  ;;  %v228_v12 = vmul.f32 %v3243_v1, %v216_v8  ;;  %v235_v13 = vmul.f32 %v3245_v2, %v216_v8  ;;  %v221_v14 = vmul.f32 %v219_v3, %v217_v11  ;;  %v3285_v36 = vld [vmem:[%s4038_s12 + $0x20] sm:$0xff]  ;;  %v3286_v37 = vld [vmem:[%s4038_s12 + $0x28] sm:$0xff]  ;;  %v3306_v39 = vld [vmem:[%s4038_s12 + $0x30] sm:$0xff]  ;;  %s3238_s22 = sshll.u32 %s203_s20, 7  ;;  %s4398_s19 = scalar_lea.sflag [#allocation4], %s203_s20 }
  0x1c   : > { %v229_v15 = vmul.f32 %v3244_v4, %v217_v11  ;;  %v236_v16 = vmul.f32 %v3246_v5, %v217_v11  ;;  %3780 = vmatprep.subr.bf16.mxu0 %v3779_v9  ;;  %v3783_v35 = vpack.c.bf16 %v3265_v34, %v3264_v33  ;;  %v3787_v38 = vpack.c.bf16 %v3286_v37, %v3285_v36  ;;  %v3307_v40 = vld [vmem:[%s4038_s12 + $0x38] sm:$0xff]  ;;  %v3327_v42 = vld [vmem:[%s4038_s12 + $0x40] sm:$0xff]  ;;  %v3328_v43 = vld [vmem:[%s4038_s12 + $0x48] sm:$0xff]  ;;  %s4215_s23 = scalar_lea.vmem [#allocation3], %s3238_s22  ;;  %s3948_s22 = smov [#allocation3]  }
  0x1d   : > { %223 = vst.msk [vmem:[#allocation2] sm:$0xff] %vm222_vm0, %v220_v10  ;;  %230 = vst.msk [vmem:[#allocation2 + $0x10] sm:$0xff] %vm222_vm0, %v228_v12  ;;  %3782 = vmatpush3.bf16.msra.mxu0 %v3779_v9  ;;  %v3791_v41 = vpack.c.bf16 %v3307_v40, %v3306_v39  ;;  %v3795_v44 = vpack.c.bf16 %v3328_v43, %v3327_v42  ;;  %v3348_v45 = vld [vmem:[%s4038_s12 + $0x50] sm:$0xff]  ;;  %v3349_v46 = vld [vmem:[%s4038_s12 + $0x58] sm:$0xff]  ;;  %s3160_s10 = sshll.u32 %s4215_s23, 4  ;;  %s3888_s27 = sshll.u32 %s3948_s22, 4  ;;  %s4390_s10 = int_to_ptr.vmem [resolvable:$true] %s3160_s10  ;;  %s3889_s27 = int_to_ptr.vmem [resolvable:$false] %s3888_s27 }
  0x1e   : > { %237 = vst.msk [vmem:[#allocation2 + $0x20] sm:$0xff] %vm222_vm0, %v235_v13  ;;  %224 = vst.msk [vmem:[#allocation2 + $0x8] sm:$0xff] %vm222_vm0, %v221_v14  ;;  %3596 = vmatprep.subr.msk.mxu0 %vm370_vm1, %v3272_v25  ;;  %v3799_v47 = vpack.c.bf16 %v3349_v46, %v3348_v45  ;;  %v3369_v48 = vld [vmem:[%s4038_s12 + $0x60] sm:$0xff]  ;;  %v3370_v49 = vld [vmem:[%s4038_s12 + $0x68] sm:$0xff]  ;;  %s3884_s14 = scalar_lea.vmem %s4390_s10, 2048  ;;  %s3890_s30 = scalar_lea.vmem %s3889_s27, 4096 }
  0x1f   : > { %231 = vst.msk [vmem:[#allocation2 + $0x18] sm:$0xff] %vm222_vm0, %v229_v15  ;;  %238 = vst.msk [vmem:[#allocation2 + $0x28] sm:$0xff] %vm222_vm0, %v236_v16  ;;  %v3803_v50 = vpack.c.bf16 %v3370_v49, %v3369_v48  ;;  %v3390_v51 = vld [vmem:[%s4038_s12 + $0x70] sm:$0xff]  ;;  %v3391_v52 = vld [vmem:[%s4038_s12 + $0x78] sm:$0xff]  ;;  %s4388_s12 = scalar_lea.hbm %s4443_s4, %s3418_s9  ;;  %p3885_p11 = scmp.ne.s32.totalorder %s4390_s10, %s3884_s14 }
  0x20   : > { %v3807_v53 = vpack.c.bf16 %v3391_v52, %v3390_v51  ;;  %v3293_v4 = vld [vmem:[%s4442_s3 + $0x4] sm:$0xf]  ;;  %v1084_v9 = vld [vmem:[%s4442_s3] sm:$0xf]  ;;  %v3300_v12 = vld [vmem:[%s4442_s3 + $0x8] sm:$0xf]  ;;  %p3891_p0 = scmp.lt.s32.totalorder %s4390_s10, %s3889_s27  ;;  %p3892_p1 = scmp.lt.s32.totalorder %s3890_s30, %s3884_s14 }
  0x21   : > { %v3356_v43 = vld [vmem:[%s4442_s3 + $0x4] sm:$0xf]  ;;  %v2164_v48 = vld [vmem:[%s4442_s3] sm:$0xf]  ;;  %v3363_v49 = vld [vmem:[%s4442_s3 + $0x8] sm:$0xf]  ;;  %p3886_p12 = pnand %p3885_p11, %p4014_p5 }
  0x22   : > { %v2524_v51 = vld [vmem:[%s4442_s3] sm:$0xf]  ;;  %v3384_v52 = vld [vmem:[%s4442_s3 + $0x8] sm:$0xf]  ;;  %p3893_p2 = por %p3892_p1, %p3891_p0 }
  0x23   : > { %p3887_p13 = pneg %p3886_p12 }
  0x24   : > { %v4060_v17 = vld [vmem:[#allocation2] sm:$0xff]  ;;  %v4062_v18 = vld [vmem:[#allocation2 + $0x10] sm:$0xff] }
  0x25   : > { %3559 = vmatprep.mubr.msk.f32.mxu0 %vm222_vm0, %v4060_v17  ;;  %v4066_v19 = vld [vmem:[#allocation2 + $0x8] sm:$0xff]  ;;  %v4074_v21 = vld [vmem:[#allocation2 + $0x20] sm:$0xff]  ;;  %p3894_p3 = pnand %p3893_p2, %p3887_p13 }
  0x26   : > { %3560 = vmatmul.mubr.msk.f32.vlgmr.msra.gmra.mrb[0].mxu0 %vm222_vm0, %v4066_v19  ;;  %v4072_v20 = vld [vmem:[#allocation2 + $0x18] sm:$0xff]  ;;  %v4080_v22 = vld [vmem:[#allocation2 + $0x28] sm:$0xff] }
  0x27   : > { %3562 = vmatprep.mubr.msk.f32.mxu0 %vm222_vm0, %v4062_v18  ;;  %3597 = vmatpush3.msk.msra.mxu0 %vm370_vm1, %v3272_v25  ;;  %v3321_v25 = vld [vmem:[%s4442_s3 + $0x8] sm:$0xf] }
  0x28   : > { %3601 = vmatprep.subr.msk.mxu0 %vm370_vm1, %v724_v54 }
  0x2a   : > { %3563 = vmatmul.mubr.msk.f32.gmra.mrb[2].mxu0 %vm222_vm0, %v4072_v20 }
  0x2b   : > { %3565 = vmatprep.mubr.msk.f32.mxu0 %vm222_vm0, %v4074_v21 }
  0x2e   : > { %3566 = vmatmul.mubr.msk.f32.gmra.mrb[4].mxu0 %vm222_vm0, %v4080_v22 }
  0xf9   : > { %v3561_v26 = vpop.f32.mrb[0].mxu0 }
  0xfa   : > { %v331_v27 = vpop.f32.mrb[1].mxu0 }
  0xfd   : > { %v3564_v28 = vpop.f32.mrb[2].mxu0 }
  0xfe   : > { %v341_v29 = vpop.f32.mrb[3].mxu0 }
  0xff   : > { %3570 = vmatprep.mubr.msk.f32.mxu1 %vm363_vm2, %v341_v29 }
 0x100   : > { %3571 = vmatmul.mubr.msk.f32.vlgmr.msra.gmra.mrb[0].mxu1 %vm363_vm2, %v3564_v28 }
 0x101   : > { %3574 = vmatpush3.msk.msra.mxu1 %vm370_vm1, %v360_v24  ;;  %3575 = vmatprep.mubr.msk.f32.mxu1 %vm363_vm2, %v331_v27  ;;  %v3567_v31 = vpop.f32.mrb[4].mxu0 }
 0x102   : > { %3578 = vmatprep.subr.msk.mxu1 %vm370_vm1, %v3260_v30  ;;  %v351_v32 = vpop.f32.mrb[5].mxu0 }
 0x108   : > { %3576 = vmatmul.mubr.msk.f32.vlgmr.msra.gmra.mrb[0].mxu1 %vm363_vm2, %v3561_v26 }
 0x109   : > { %3579 = vmatpush3.msk.msra.mxu1 %vm370_vm1, %v3260_v30  ;;  %3580 = vmatprep.mubr.msk.f32.mxu1 %vm363_vm2, %v351_v32  ;;  %v3335_v30 = vld [vmem:[%s4442_s3 + $0x4] sm:$0xf] }
 0x10a   : > { %3784 = vmatprep.subr.bf16.mxu1 %v3783_v35 }
 0x110   : > { %3581 = vmatmul.mubr.msk.f32.vlgmr.msra.gmra.mrb[0].mxu1 %vm363_vm2, %v3567_v31 }
 0x111   : > { %3786 = vmatpush3.bf16.msra.mxu1 %v3783_v35  ;;  %3587 = vmatprep.mubr.msk.f32.mxu1 %vm222_vm0, %v4060_v17  ;;  %v1804_v35 = vld [vmem:[%s4442_s3] sm:$0xf] }
 0x112   : > { %3788 = vmatprep.subr.bf16.mxu1 %v3787_v38 }
 0x114   : > { %3588 = vmatmul.mubr.msk.f32.vlgmr.msra.gmra.mrb[2].mxu1 %vm222_vm0, %v4066_v19 }
 0x115   : > { %3590 = vmatprep.mubr.msk.f32.mxu1 %vm222_vm0, %v4062_v18  ;;  %3790 = vmatpush3.bf16.msra.mxu1 %v3787_v38  ;;  %v3342_v38 = vld [vmem:[%s4442_s3 + $0x8] sm:$0xf] }
 0x116   : > { %3792 = vmatprep.subr.bf16.mxu1 %v3791_v41 }
 0x118   : > { %3591 = vmatmul.mubr.msk.f32.gmra.mrb[4].mxu1 %vm222_vm0, %v4072_v20 }
 0x119   : > { %3593 = vmatprep.mubr.msk.f32.mxu1 %vm222_vm0, %v4074_v21 }
 0x11c   : > { %3594 = vmatmul.mubr.msk.f32.gmra.mrb[6].mxu1 %vm222_vm0, %v4080_v22 }
 0x11d   : > { %3615 = vmatprep.mubr.msk.f32.mxu1 %vm222_vm0, %v4060_v17 }
 0x120   : > { %3616 = vmatmul.mubr.msk.f32.vlgmr.msra.gmra.mrb[8].mxu1 %vm222_vm0, %v4066_v19 }
 0x121   : > { %3618 = vmatprep.mubr.msk.f32.mxu1 %vm222_vm0, %v4062_v18  ;;  %3794 = vmatpush3.bf16.msra.mxu1 %v3791_v41 }
 0x122   : > { %3796 = vmatprep.subr.bf16.mxu1 %v3795_v44 }
 0x124   : > { %3619 = vmatmul.mubr.msk.f32.gmra.mrb[10].mxu1 %vm222_vm0, %v4072_v20 }
 0x125   : > { %3621 = vmatprep.mubr.msk.f32.mxu1 %vm222_vm0, %v4074_v21 }
 0x128   : > { %3622 = vmatmul.mubr.msk.f32.gmra.mrb[12].mxu1 %vm222_vm0, %v4080_v22 }
 0x129   : > { %3643 = vmatprep.mubr.msk.f32.mxu1 %vm222_vm0, %v4060_v17 }
 0x12c   : > { %3644 = vmatmul.mubr.msk.f32.vlgmr.msra.gmra.mrb[14].mxu1 %vm222_vm0, %v4066_v19 }
 0x12d   : > { %3646 = vmatprep.mubr.msk.f32.mxu1 %vm222_vm0, %v4062_v18  ;;  %3798 = vmatpush3.bf16.msra.mxu1 %v3795_v44 }
 0x12e   : > { %3800 = vmatprep.subr.bf16.mxu1 %v3799_v47 }
 0x130   : > { %3647 = vmatmul.mubr.msk.f32.gmra.mrb[16].mxu1 %vm222_vm0, %v4072_v20 }
 0x131   : > { %3649 = vmatprep.mubr.msk.f32.mxu1 %vm222_vm0, %v4074_v21 }
 0x134   : > { %3650 = vmatmul.mubr.msk.f32.gmra.mrb[18].mxu1 %vm222_vm0, %v4080_v22 }
 0x135   : > { %3671 = vmatprep.mubr.msk.f32.mxu1 %vm222_vm0, %v4060_v17 }
 0x138   : > { %3672 = vmatmul.mubr.msk.f32.vlgmr.msra.gmra.mrb[20].mxu1 %vm222_vm0, %v4066_v19 }
 0x139   : > { %3674 = vmatprep.mubr.msk.f32.mxu1 %vm222_vm0, %v4062_v18  ;;  %3802 = vmatpush3.bf16.msra.mxu1 %v3799_v47 }
 0x13a   : > { %3804 = vmatprep.subr.bf16.mxu1 %v3803_v50 }
 0x13c   : > { %3675 = vmatmul.mubr.msk.f32.gmra.mrb[22].mxu1 %vm222_vm0, %v4072_v20 }
 0x13d   : > { %3677 = vmatprep.mubr.msk.f32.mxu1 %vm222_vm0, %v4074_v21 }
 0x140   : > { %3678 = vmatmul.mubr.msk.f32.gmra.mrb[24].mxu1 %vm222_vm0, %v4080_v22 }
 0x141   : > { %3699 = vmatprep.mubr.msk.f32.mxu1 %vm222_vm0, %v4060_v17 }
 0x144   : > { %3700 = vmatmul.mubr.msk.f32.vlgmr.msra.gmra.mrb[26].mxu1 %vm222_vm0, %v4066_v19 }
 0x145   : > { %3702 = vmatprep.mubr.msk.f32.mxu1 %vm222_vm0, %v4062_v18  ;;  %3806 = vmatpush3.bf16.msra.mxu1 %v3803_v50  ;;  %v3377_v50 = vld [vmem:[%s4442_s3 + $0x4] sm:$0xf] }
 0x146   : > { %3808 = vmatprep.subr.bf16.mxu1 %v3807_v53 }
 0x148   : > { %3703 = vmatmul.mubr.msk.f32.gmra.mrb[28].mxu1 %vm222_vm0, %v4072_v20 }
 0x149   : > { %3705 = vmatprep.mubr.msk.f32.mxu1 %vm222_vm0, %v4074_v21 }
 0x14c   : > { %3706 = vmatmul.mubr.msk.f32.gmra.mrb[30].mxu1 %vm222_vm0, %v4080_v22 }
 0x14d   : > { %3727 = vmatprep.mubr.msk.f32.mxu1 %vm222_vm0, %v4060_v17 }
 0x150   : > { %3728 = vmatmul.mubr.msk.f32.vlgmr.msra.gmra.mrb[32].mxu1 %vm222_vm0, %v4066_v19 }
 0x151   : > { %3730 = vmatprep.mubr.msk.f32.mxu1 %vm222_vm0, %v4062_v18  ;;  %3810 = vmatpush3.bf16.msra.mxu1 %v3807_v53  ;;  %v3398_v53 = vld [vmem:[%s4442_s3 + $0x4] sm:$0xf] }
 0x154   : > { %3731 = vmatmul.mubr.msk.f32.gmra.mrb[34].mxu1 %vm222_vm0, %v4072_v20 }
 0x155   : > { %3733 = vmatprep.mubr.msk.f32.mxu1 %vm222_vm0, %v4074_v21 }
 0x158   : > { %3734 = vmatmul.mubr.msk.f32.gmra.mrb[36].mxu1 %vm222_vm0, %v4080_v22 }
 0x159   : > { %3755 = vmatprep.mubr.msk.f32.mxu1 %vm222_vm0, %v4060_v17  ;;  %v3314_v17 = vld [vmem:[%s4442_s3 + $0x4] sm:$0xf] }
 0x15c   : > { %3756 = vmatmul.mubr.msk.f32.vlgmr.msra.gmra.mrb[38].mxu1 %vm222_vm0, %v4066_v19 }
 0x15d   : > { %3758 = vmatprep.mubr.msk.f32.mxu1 %vm222_vm0, %v4062_v18 }
 0x160   : > { %3759 = vmatmul.mubr.msk.f32.gmra.mrb[40].mxu1 %vm222_vm0, %v4072_v20 }
 0x161   : > { %3761 = vmatprep.mubr.msk.f32.mxu1 %vm222_vm0, %v4074_v21 }
 0x164   : > { %3762 = vmatmul.mubr.msk.f32.gmra.mrb[42].mxu1 %vm222_vm0, %v4080_v22  ;;  %v1444_v22 = vld [vmem:[%s4442_s3] sm:$0xf] }
 0x1e3   : > { %v3582_v55 = vpop.f32.mrb[0].mxu1 }
 0x1e4   : > { %v622_v56 = vmax.f32 %v3582_v55, 0.0  ;;  %v610_v57 = vpop.f32.mrb[1].mxu1  ;;  %v3405_v55 = vld [vmem:[%s4442_s3 + $0x8] sm:$0xf] }
 0x1e5   : > { %v621_v58 = vmax.f32 %v610_v57, 0.0 }
 0x1e6   : > { %625 = vst.msk [vmem:[%s4215_s23 + $0x8] sm:$0xff] %vm623_vm3, %v622_v56 }
 0x1e7   : > { %624 = vst.msk [vmem:[%s4215_s23] sm:$0xff] %vm623_vm3, %v621_v58  ;;  %v3589_v59 = vpop.f32.mrb[2].mxu1 }
 0x1e8   : > { %v695_v60 = vpop.f32.mrb[3].mxu1 }
 0x1eb   : > { %v3592_v61 = vpop.f32.mrb[4].mxu1 }
 0x1ec   : > { %v705_v62 = vpop.f32.mrb[5].mxu1 }
 0x1ed   : > { %3598 = vmatprep.mubr.msk.f32.mxu0 %vm363_vm2, %v705_v62 }
 0x1ee   : > { %3599 = vmatmul.mubr.msk.f32.vlgmr.msra.gmra.mrb[6].mxu0 %vm363_vm2, %v3592_v61 }
 0x1ef   : > { %3602 = vmatpush3.msk.msra.mxu0 %vm370_vm1, %v724_v54  ;;  %3603 = vmatprep.mubr.msk.f32.mxu0 %vm363_vm2, %v695_v60  ;;  %v3595_v0 = vpop.f32.mrb[6].mxu1  ;;  %v2884_v54 = vld [vmem:[%s4442_s3] sm:$0xf] }
 0x1f0   : > { %3606 = vmatprep.subr.msk.mxu0 %vm370_vm1, %v3279_v63  ;;  %v715_v1 = vpop.f32.mrb[7].mxu1 }
 0x1f3   : > { %v3617_v2 = vpop.f32.mrb[8].mxu1 }
 0x1f4   : > { %v1055_v3 = vpop.f32.mrb[9].mxu1 }
 0x1f6   : > { %3604 = vmatmul.mubr.msk.f32.vlgmr.msra.gmra.mrb[6].mxu0 %vm363_vm2, %v3589_v59 }
 0x1f7   : > { %3607 = vmatpush3.msk.msra.mxu0 %vm370_vm1, %v3279_v63  ;;  %3608 = vmatprep.mubr.msk.f32.mxu0 %vm363_vm2, %v715_v1  ;;  %v3620_v5 = vpop.f32.mrb[10].mxu1 }
 0x1f8   : > { %3624 = vmatprep.subr.msk.mxu0 %vm370_vm1, %v3293_v4  ;;  %v1065_v6 = vpop.f32.mrb[11].mxu1 }
 0x1fb   : > { %v3623_v7 = vpop.f32.mrb[12].mxu1 }
 0x1fc   : > { %v1075_v8 = vpop.f32.mrb[13].mxu1 }
 0x1fe   : > { %3609 = vmatmul.mubr.msk.f32.vlgmr.msra.gmra.mrb[6].mxu0 %vm363_vm2, %v3595_v0 }
 0x1ff   : > { %3625 = vmatpush3.msk.msra.mxu0 %vm370_vm1, %v3293_v4  ;;  %3626 = vmatprep.mubr.msk.f32.mxu0 %vm363_vm2, %v1065_v6  ;;  %v3645_v10 = vpop.f32.mrb[14].mxu1 }
 0x200   : > { %3629 = vmatprep.subr.msk.mxu0 %vm370_vm1, %v1084_v9  ;;  %v1415_v11 = vpop.f32.mrb[15].mxu1 }
 0x202   : > { %3627 = vmatmul.mubr.msk.f32.vlgmr.msra.gmra.mrb[8].mxu0 %vm363_vm2, %v3620_v5 }
 0x203   : > { %3630 = vmatpush3.msk.msra.mxu0 %vm370_vm1, %v1084_v9  ;;  %3631 = vmatprep.mubr.msk.f32.mxu0 %vm363_vm2, %v1055_v3  ;;  %v3648_v13 = vpop.f32.mrb[16].mxu1 }
 0x204   : > { %3634 = vmatprep.subr.msk.mxu0 %vm370_vm1, %v3300_v12  ;;  %v1425_v14 = vpop.f32.mrb[17].mxu1 }
 0x207   : > { %v3651_v15 = vpop.f32.mrb[18].mxu1 }
 0x208   : > { %v1435_v16 = vpop.f32.mrb[19].mxu1 }
 0x20a   : > { %3632 = vmatmul.mubr.msk.f32.vlgmr.msra.gmra.mrb[8].mxu0 %vm363_vm2, %v3617_v2 }
 0x20b   : > { %3635 = vmatpush3.msk.msra.mxu0 %vm370_vm1, %v3300_v12  ;;  %3636 = vmatprep.mubr.msk.f32.mxu0 %vm363_vm2, %v1075_v8  ;;  %v3673_v18 = vpop.f32.mrb[20].mxu1 }
 0x20c   : > { %3652 = vmatprep.subr.msk.mxu0 %vm370_vm1, %v3314_v17  ;;  %v1775_v19 = vpop.f32.mrb[21].mxu1 }
 0x20f   : > { %v3676_v20 = vpop.f32.mrb[22].mxu1 }
 0x210   : > { %v1785_v21 = vpop.f32.mrb[23].mxu1 }
 0x212   : > { %3637 = vmatmul.mubr.msk.f32.vlgmr.msra.gmra.mrb[8].mxu0 %vm363_vm2, %v3623_v7 }
 0x213   : > { %3653 = vmatpush3.msk.msra.mxu0 %vm370_vm1, %v3314_v17  ;;  %3654 = vmatprep.mubr.msk.f32.mxu0 %vm363_vm2, %v1425_v14  ;;  %v3679_v23 = vpop.f32.mrb[24].mxu1 }
 0x214   : > { %3657 = vmatprep.subr.msk.mxu0 %vm370_vm1, %v1444_v22  ;;  %v1795_v24 = vpop.f32.mrb[25].mxu1 }
 0x216   : > { %3655 = vmatmul.mubr.msk.f32.vlgmr.msra.gmra.mrb[10].mxu0 %vm363_vm2, %v3648_v13 }
 0x217   : > { %3658 = vmatpush3.msk.msra.mxu0 %vm370_vm1, %v1444_v22  ;;  %3659 = vmatprep.mubr.msk.f32.mxu0 %vm363_vm2, %v1415_v11  ;;  %v3701_v26 = vpop.f32.mrb[26].mxu1 }
 0x218   : > { %3662 = vmatprep.subr.msk.mxu0 %vm370_vm1, %v3321_v25  ;;  %v2135_v27 = vpop.f32.mrb[27].mxu1 }
 0x21b   : > { %v3704_v28 = vpop.f32.mrb[28].mxu1 }
 0x21c   : > { %v2145_v29 = vpop.f32.mrb[29].mxu1 }
 0x21e   : > { %3660 = vmatmul.mubr.msk.f32.vlgmr.msra.gmra.mrb[10].mxu0 %vm363_vm2, %v3645_v10 }
 0x21f   : > { %3663 = vmatpush3.msk.msra.mxu0 %vm370_vm1, %v3321_v25  ;;  %3664 = vmatprep.mubr.msk.f32.mxu0 %vm363_vm2, %v1435_v16  ;;  %v3707_v31 = vpop.f32.mrb[30].mxu1 }
 0x220   : > { %3680 = vmatprep.subr.msk.mxu0 %vm370_vm1, %v3335_v30  ;;  %v2155_v32 = vpop.f32.mrb[31].mxu1 }
 0x223   : > { %v3729_v33 = vpop.f32.mrb[32].mxu1 }
 0x224   : > { %v2495_v34 = vpop.f32.mrb[33].mxu1 }
 0x226   : > { %3665 = vmatmul.mubr.msk.f32.vlgmr.msra.gmra.mrb[10].mxu0 %vm363_vm2, %v3651_v15 }
 0x227   : > { %3681 = vmatpush3.msk.msra.mxu0 %vm370_vm1, %v3335_v30  ;;  %3682 = vmatprep.mubr.msk.f32.mxu0 %vm363_vm2, %v1785_v21  ;;  %v3732_v36 = vpop.f32.mrb[34].mxu1 }
 0x228   : > { %3685 = vmatprep.subr.msk.mxu0 %vm370_vm1, %v1804_v35  ;;  %v2505_v37 = vpop.f32.mrb[35].mxu1 }
 0x22a   : > { %3683 = vmatmul.mubr.msk.f32.vlgmr.msra.gmra.mrb[12].mxu0 %vm363_vm2, %v3676_v20 }
 0x22b   : > { %3686 = vmatpush3.msk.msra.mxu0 %vm370_vm1, %v1804_v35  ;;  %3687 = vmatprep.mubr.msk.f32.mxu0 %vm363_vm2, %v1775_v19  ;;  %v3735_v39 = vpop.f32.mrb[36].mxu1 }
 0x22c   : > { %3690 = vmatprep.subr.msk.mxu0 %vm370_vm1, %v3342_v38  ;;  %v2515_v40 = vpop.f32.mrb[37].mxu1 }
 0x22f   : > { %v3757_v41 = vpop.f32.mrb[38].mxu1 }
 0x230   : > { %v2855_v42 = vpop.f32.mrb[39].mxu1 }
 0x232   : > { %3688 = vmatmul.mubr.msk.f32.vlgmr.msra.gmra.mrb[12].mxu0 %vm363_vm2, %v3673_v18 }
 0x233   : > { %3691 = vmatpush3.msk.msra.mxu0 %vm370_vm1, %v3342_v38  ;;  %3692 = vmatprep.mubr.msk.f32.mxu0 %vm363_vm2, %v1795_v24  ;;  %v3760_v44 = vpop.f32.mrb[40].mxu1 }
 0x234   : > { %3708 = vmatprep.subr.msk.mxu0 %vm370_vm1, %v3356_v43  ;;  %v2865_v45 = vpop.f32.mrb[41].mxu1 }
 0x237   : > { %v3763_v46 = vpop.f32.mrb[42].mxu1 }
 0x238   : > { %v2875_v47 = vpop.f32.mrb[43].mxu1 }
 0x23a   : > { %3693 = vmatmul.mubr.msk.f32.vlgmr.msra.gmra.mrb[12].mxu0 %vm363_vm2, %v3679_v23 }
 0x23b   : > { %3709 = vmatpush3.msk.msra.mxu0 %vm370_vm1, %v3356_v43  ;;  %3710 = vmatprep.mubr.msk.f32.mxu0 %vm363_vm2, %v2145_v29 }
 0x23c   : > { %3713 = vmatprep.subr.msk.mxu0 %vm370_vm1, %v2164_v48 }
 0x23e   : > { %3711 = vmatmul.mubr.msk.f32.vlgmr.msra.gmra.mrb[14].mxu0 %vm363_vm2, %v3704_v28 }
 0x23f   : > { %3714 = vmatpush3.msk.msra.mxu0 %vm370_vm1, %v2164_v48  ;;  %3715 = vmatprep.mubr.msk.f32.mxu0 %vm363_vm2, %v2135_v27 }
 0x240   : > { %3718 = vmatprep.subr.msk.mxu0 %vm370_vm1, %v3363_v49 }
 0x246   : > { %3716 = vmatmul.mubr.msk.f32.vlgmr.msra.gmra.mrb[14].mxu0 %vm363_vm2, %v3701_v26 }
 0x247   : > { %3719 = vmatpush3.msk.msra.mxu0 %vm370_vm1, %v3363_v49  ;;  %3720 = vmatprep.mubr.msk.f32.mxu0 %vm363_vm2, %v2155_v32 }
 0x248   : > { %3736 = vmatprep.subr.msk.mxu0 %vm370_vm1, %v3377_v50 }
 0x24e   : > { %3721 = vmatmul.mubr.msk.f32.vlgmr.msra.gmra.mrb[14].mxu0 %vm363_vm2, %v3707_v31 }
 0x24f   : > { %3737 = vmatpush3.msk.msra.mxu0 %vm370_vm1, %v3377_v50  ;;  %3738 = vmatprep.mubr.msk.f32.mxu0 %vm363_vm2, %v2505_v37 }
 0x250   : > { %3741 = vmatprep.subr.msk.mxu0 %vm370_vm1, %v2524_v51 }
 0x252   : > { %3739 = vmatmul.mubr.msk.f32.vlgmr.msra.gmra.mrb[16].mxu0 %vm363_vm2, %v3732_v36 }
 0x253   : > { %3742 = vmatpush3.msk.msra.mxu0 %vm370_vm1, %v2524_v51  ;;  %3743 = vmatprep.mubr.msk.f32.mxu0 %vm363_vm2, %v2495_v34 }
 0x254   : > { %3746 = vmatprep.subr.msk.mxu0 %vm370_vm1, %v3384_v52 }
 0x25a   : > { %3744 = vmatmul.mubr.msk.f32.vlgmr.msra.gmra.mrb[16].mxu0 %vm363_vm2, %v3729_v33 }
 0x25b   : > { %3747 = vmatpush3.msk.msra.mxu0 %vm370_vm1, %v3384_v52  ;;  %3748 = vmatprep.mubr.msk.f32.mxu0 %vm363_vm2, %v2515_v40 }
 0x25c   : > { %3764 = vmatprep.subr.msk.mxu0 %vm370_vm1, %v3398_v53 }
 0x262   : > { %3749 = vmatmul.mubr.msk.f32.vlgmr.msra.gmra.mrb[16].mxu0 %vm363_vm2, %v3735_v39 }
 0x263   : > { %3765 = vmatpush3.msk.msra.mxu0 %vm370_vm1, %v3398_v53  ;;  %3766 = vmatprep.mubr.msk.f32.mxu0 %vm363_vm2, %v2865_v45 }
 0x264   : > { %3769 = vmatprep.subr.msk.mxu0 %vm370_vm1, %v2884_v54 }
 0x266   : > { %3767 = vmatmul.mubr.msk.f32.vlgmr.msra.gmra.mrb[18].mxu0 %vm363_vm2, %v3760_v44 }
 0x267   : > { %3770 = vmatpush3.msk.msra.mxu0 %vm370_vm1, %v2884_v54  ;;  %3771 = vmatprep.mubr.msk.f32.mxu0 %vm363_vm2, %v2855_v42 }
 0x268   : > { %3774 = vmatprep.subr.msk.mxu0 %vm370_vm1, %v3405_v55 }
 0x26e   : > { %3772 = vmatmul.mubr.msk.f32.vlgmr.msra.gmra.mrb[18].mxu0 %vm363_vm2, %v3757_v41 }
 0x26f   : > { %3775 = vmatpush3.msk.msra.mxu0 %vm370_vm1, %v3405_v55  ;;  %3776 = vmatprep.mubr.msk.f32.mxu0 %vm363_vm2, %v2875_v47 }
 0x276   : > { %3777 = vmatmul.mubr.msk.f32.vlgmr.msra.gmra.mrb[18].mxu0 %vm363_vm2, %v3763_v46 }
 0x2d1   : > { %v3610_v56 = vpop.f32.mrb[6].mxu0 }
 0x2d2   : > { %v982_v57 = vmax.f32 %v3610_v56, 0.0  ;;  %v970_v58 = vpop.f32.mrb[7].mxu0 }
 0x2d3   : > { %v981_v59 = vmax.f32 %v970_v58, 0.0 }
 0x2d4   : > { %3284 = vst.msk [vmem:[%s4215_s23 + $0x18] sm:$0xff] %vm623_vm3, %v982_v57 }
 0x2d5   : > { %3283 = vst.msk [vmem:[%s4215_s23 + $0x10] sm:$0xff] %vm623_vm3, %v981_v59 }
 0x2e5   : > { %v3638_v60 = vpop.f32.mrb[8].mxu0 }
 0x2e6   : > { %v1342_v61 = vmax.f32 %v3638_v60, 0.0  ;;  %v1330_v62 = vpop.f32.mrb[9].mxu0 }
 0x2e7   : > { %v1341_v63 = vmax.f32 %v1330_v62, 0.0 }
 0x2e8   : > { %3305 = vst.msk [vmem:[%s4215_s23 + $0x28] sm:$0xff] %vm623_vm3, %v1342_v61 }
 0x2e9   : > { %3304 = vst.msk [vmem:[%s4215_s23 + $0x20] sm:$0xff] %vm623_vm3, %v1341_v63 }
 0x2f9   : > { %v3666_v0 = vpop.f32.mrb[10].mxu0 }
 0x2fa   : > { %v1702_v1 = vmax.f32 %v3666_v0, 0.0  ;;  %v1690_v2 = vpop.f32.mrb[11].mxu0 }
 0x2fb   : > { %v1701_v3 = vmax.f32 %v1690_v2, 0.0 }
 0x2fc   : > { %3326 = vst.msk [vmem:[%s4215_s23 + $0x38] sm:$0xff] %vm623_vm3, %v1702_v1 }
 0x2fd   : > { %3325 = vst.msk [vmem:[%s4215_s23 + $0x30] sm:$0xff] %vm623_vm3, %v1701_v3 }
 0x30d   : > { %v3694_v4 = vpop.f32.mrb[12].mxu0 }
 0x30e   : > { %v2062_v5 = vmax.f32 %v3694_v4, 0.0  ;;  %v2050_v6 = vpop.f32.mrb[13].mxu0 }
 0x30f   : > { %v2061_v7 = vmax.f32 %v2050_v6, 0.0 }
 0x310   : > { %3347 = vst.msk [vmem:[%s4215_s23 + $0x48] sm:$0xff] %vm623_vm3, %v2062_v5 }
 0x311   : > { %3346 = vst.msk [vmem:[%s4215_s23 + $0x40] sm:$0xff] %vm623_vm3, %v2061_v7 }
 0x321   : > { %v3722_v8 = vpop.f32.mrb[14].mxu0 }
 0x322   : > { %v2422_v9 = vmax.f32 %v3722_v8, 0.0  ;;  %v2410_v10 = vpop.f32.mrb[15].mxu0 }
 0x323   : > { %v2421_v11 = vmax.f32 %v2410_v10, 0.0 }
 0x324   : > { %3368 = vst.msk [vmem:[%s4215_s23 + $0x58] sm:$0xff] %vm623_vm3, %v2422_v9 }
 0x325   : > { %3367 = vst.msk [vmem:[%s4215_s23 + $0x50] sm:$0xff] %vm623_vm3, %v2421_v11 }
 0x335   : > { %v3750_v12 = vpop.f32.mrb[16].mxu0 }
 0x336   : > { %v2782_v13 = vmax.f32 %v3750_v12, 0.0  ;;  %v2770_v14 = vpop.f32.mrb[17].mxu0 }
 0x337   : > { %v2781_v15 = vmax.f32 %v2770_v14, 0.0 }
 0x338   : > { %3389 = vst.msk [vmem:[%s4215_s23 + $0x68] sm:$0xff] %vm623_vm3, %v2782_v13 }
 0x339   : > { %3388 = vst.msk [vmem:[%s4215_s23 + $0x60] sm:$0xff] %vm623_vm3, %v2781_v15 }
 0x349   : > { %v3778_v16 = vpop.f32.mrb[18].mxu0 }
 0x34a   : > { %v3142_v17 = vmax.f32 %v3778_v16, 0.0  ;;  %v3130_v18 = vpop.f32.mrb[19].mxu0 }
 0x34b   : > { %v3141_v19 = vmax.f32 %v3130_v18, 0.0 }
 0x34c   : > { %3410 = vst.msk [vmem:[%s4215_s23 + $0x78] sm:$0xff] %vm623_vm3, %v3142_v17 }
 0x34d   : > { %3409 = vst.msk [vmem:[%s4215_s23 + $0x70] sm:$0xff] %vm623_vm3, %v3141_v19 }
 0x34e   : > { %3897 = shalt.err (!%p3894_p3)
}
 0x34f   : > { %s3898_s20 = scalar_lea.hbm %s4388_s12, 2048  ;;  %s3902_s6 = scalar_lea.hbm %s4443_s4, 4096 }
 0x350   : > { %p3899_p4 = scmp.ne.s32.totalorder %s4388_s12, %s3898_s20  ;;  %p3903_p9 = scmp.lt.u32.totalorder %s4388_s12, %s4443_s4 }
 0x351   : > { %p3904_p10 = scmp.lt.u32.totalorder %s3902_s6, %s3898_s20  ;;  %p3906_p12 = scmp.lt.u32.totalorder %s3898_s20, %s4388_s12 }
 0x352   : > { %p3900_p7 = pnand %p3899_p4, %p4014_p5 }
 0x353   : > { %p3905_p11 = por %p3904_p10, %p3903_p9 }
 0x354   : > { %p3901_p8 = pneg %p3900_p7 }
 0x355   : > { %p3907_p13 = por %p3906_p12, %p3905_p11 }
 0x357   : > { %p3908_p0 = pnand %p3907_p13, %p3901_p8 }
 0x359   : > { %3911 = shalt.err (!%p3908_p0)
}
 0x35a   : > { %s3949_s7 = smov 128   ;;  %s3950_s8 = smov 8  }
 0x35b   : > { %3843 = dma.vmem_to_hbm [thread:$0]  (%p4014_p5), %s4390_s10, 2048, %s4388_s12, %s4398_s19, %s3949_s7, %s3949_s7, %s3950_s8  }
 0x35c PF: > { %p3849_p1 = scmp.ge.s32.totalorder %s3946_s18, 2  ;;  %s3175_s9 = sand.u32 1, %s3934_s15  }
 0x35d   : > { %s3176_s11 = scalar_lea.sflag [#allocation4], %s3175_s9 }
 0x35e   : > { %p3846_p2 = pnand %p3849_p1, %p4018_p6 }
 0x360   : > { %3929 = dma.done.wait (!%p3846_p2), %s3176_s11, 2048  }
 0x361   : > { %3931 = vsyncadd (!%p3846_p2), %s3176_s11, 4294965248  ;;  %p14_p3 = scmp.ge.s32.totalorder %s4001_s21, 4   ;;  %s4446_s15 = smov %s3938_s16 }
 0x362   : > { %s4447_s16 = smov %s3942_s17  ;;  %s4448_s17 = smov %s4012_s24 }
 0x363   : > { %s4449_s18 = smov %s4001_s21  ;;  %16 = sbr.rel (!%p14_p3) target bundleno = 3 (0x3), region = 92 }
 0x36a   :  { %3181 = vsyncpa [#allocation4], 1 }
 0x36b   :  { %3183 = vsyncpa [#allocation4 + $0x1], 1 }

</bundles_post_ra>
